<compile_context>
chip_gen: v7x
topology: tpu7x:2x2x1
jax: 0.10.0
libtpu: 0.0.40
codegen_flags: <defaults>
</compile_context>

<pallas_src>
import functools

import jax
import jax.numpy as jnp
from jax import lax
from jax.experimental import pallas as pl
from jax.experimental.pallas import tpu as pltpu

NEG_SLOPE = 0.01                 # PyTorch nn.LeakyReLU default negative_slope
ACC_BYTES_TARGET = 128 * 1024    # keep the f32 accumulator chunk ~half the vreg file


def _round_up(x, m):
    return ((x + m - 1) // m) * m


def _lane_pad(cout):
    # v6e/v7x MXU is 2x256^2: use a 256-wide N tile when the real channel count
    # warrants it; otherwise 128 (matches v5e's 4x128^2, avoids 2x waste for small Cout).
    return _round_up(cout, 256 if cout > 128 else 128)


# ---------------- fused ConvBlock kernel -------------------------------------
def _conv_block_kernel(*refs, num_convs, hout, wout, coutp, chunk_h):
    """Whole ConvBlock for one batch element per grid step.

    refs layout:
      [x0_patches, w0, b0, w1, b1, ..., w_{L-1}, b_{L-1}, o_ref, act_scratch...]
    x0_patches: (1, Hout*Wout, K0p) bf16   layer-0 im2col (stride-2 conv == one matmul)
    w_l:        (K_l, Coutp)        bf16   K_0 = K0p, K_l = 9*Coutp for l >= 1
    b_l:        (1, Coutp)          f32
    o_ref:      (1, Hout, Wout, Coutp)
    act_*:      (Hout+2, Wout+2, Coutp) bf16 VMEM ping-pong buffers (zero halo)
    """
    x0_ref = refs[0]
    w_refs = [refs[1 + 2 * l] for l in range(num_convs)]
    b_refs = [refs[2 + 2 * l] for l in range(num_convs)]
    o_ref = refs[1 + 2 * num_convs]
    act_refs = list(refs[2 + 2 * num_convs:])
    n_act = len(act_refs)

    # Zero the inter-layer buffers once per image: the 1-pixel halo is never
    # written by the layer stores and supplies the stride-1 convs' zero padding.
    for a in act_refs:
        a[...] = jnp.zeros(a.shape, a.dtype)

    n_chunks = pl.cdiv(hout, chunk_h)
    uniform = (hout % chunk_h == 0)

    def run_layer(li):
        w_ref, b_ref = w_refs[li], b_refs[li]
        last = li == num_convs - 1

        def do_chunk(r0):
            # Build the (chunk_M, K) patch for this chunk of output rows and do a
            # single deep-K MXU dot (one result drain per chunk instead of 9).
            if li == 0:
                patch = x0_ref[0, pl.ds(r0 * wout, chunk_h * wout), :]
            else:
                src = act_refs[(li - 1) % n_act]
                pieces = [src[pl.ds(r0 + ky, chunk_h), kx:kx + wout, :]
                          for ky in range(3) for kx in range(3)]
                # NOTE: if wout % 8 != 0 this reshape re-tiles (extra VMEM copy);
                # acceptable -- the dominant cost is the K = 9*Coutp matmul.
                patch = jnp.concatenate(pieces, axis=-1)     # (ch, Wout, 9*Cinp)
                patch = patch.reshape(chunk_h * wout, patch.shape[-1])
            acc = jnp.dot(patch, w_ref[...], preferred_element_type=jnp.float32)
            acc = acc + b_ref[...]
            y = jnp.where(acc >= 0, acc, NEG_SLOPE * acc)    # LeakyReLU in f32
            y3 = y.reshape(chunk_h, wout, coutp)
            if last:
                o_ref[0, pl.ds(r0, chunk_h), :, :] = y3.astype(o_ref.dtype)
            else:
                dst = act_refs[li % n_act]
                dst[pl.ds(r0 + 1, chunk_h), 1:1 + wout, :] = y3.astype(dst.dtype)

        if n_chunks == 1:
            do_chunk(0)
        else:
            def body(i, carry):
                if uniform:
                    r0 = pl.multiple_of(i * chunk_h, chunk_h)
                else:
                    # last chunk overlaps the previous one (recomputes a few rows)
                    r0 = jnp.minimum(i * chunk_h, hout - chunk_h)
                do_chunk(r0)
                return carry
            lax.fori_loop(0, n_chunks, body, 0)

    for li in range(num_convs):
        run_layer(li)


# ---------------- pallas_call wrapper ----------------------------------------
def conv_block_pallas(x0_patches, packed, hout, wout, out_dtype):
    n, m_tot, k0p = x0_patches.shape
    num_convs = len(packed)
    coutp = packed[0][0].shape[-1]
    n_act = 0 if num_convs == 1 else (1 if num_convs == 2 else 2)

    # Row-chunk size so the f32 acc (chunk_M x Coutp) stays vreg-resident.
    rows_target = max(1, ACC_BYTES_TARGET // (4 * coutp))
    chunk_h = max(1, min(hout, rows_target // max(wout, 1)))

    kernel = functools.partial(
        _conv_block_kernel, num_convs=num_convs, hout=hout, wout=wout,
        coutp=coutp, chunk_h=chunk_h)

    in_specs = [pl.BlockSpec((1, m_tot, k0p), lambda i: (i, 0, 0))]
    inputs = [x0_patches]
    for w_p, b_p, _ in packed:
        in_specs.append(pl.BlockSpec(w_p.shape, lambda i: (0, 0)))   # resident weights
        in_specs.append(pl.BlockSpec(b_p.shape, lambda i: (0, 0)))   # resident bias
        inputs.extend([w_p, b_p])
    out_specs = pl.BlockSpec((1, hout, wout, coutp), lambda i: (i, 0, 0, 0))
    scratch_shapes = [pltpu.VMEM((hout + 2, wout + 2, coutp), jnp.bfloat16)
                      for _ in range(n_act)]

    # VMEM budget (double-buffered pipelined blocks + resident weights + scratch).
    out_el = jnp.dtype(out_dtype).itemsize
    w_bytes = sum(int(w.size) * 2 + int(b.size) * 4 for w, b, _ in packed)
    x0_block = m_tot * k0p * 2
    out_block = hout * wout * coutp * out_el
    act_bytes = n_act * (hout + 2) * (wout + 2) * coutp * 2
    tmp_bytes = chunk_h * wout * (9 * coutp * 2 + coutp * 4)
    vmem_est = 2 * (x0_block + out_block) + 2 * w_bytes + act_bytes + tmp_bytes
    vmem_limit = int(min(110 * 2 ** 20, max(32 * 2 ** 20, 2 * vmem_est)))

    flops = 2 * n * m_tot * coutp * (k0p + (num_convs - 1) * 9 * coutp)
    bytes_accessed = n * x0_block + n * out_block + w_bytes

    return pl.pallas_call(
        kernel,
        out_shape=jax.ShapeDtypeStruct((n, hout, wout, coutp), out_dtype),
        grid=(n,),
        in_specs=in_specs,
        out_specs=out_specs,
        scratch_shapes=scratch_shapes,
        compiler_params=pltpu.CompilerParams(
            dimension_semantics=("parallel",),      # batch sharded over TCs (megacore)
            vmem_limit_bytes=vmem_limit),
        cost_estimate=pl.CostEstimate(flops=flops, transcendentals=0,
                                      bytes_accessed=bytes_accessed),
    )(*inputs)


# ---------------- parameter init / packing ------------------------------------
def init_conv_params(key, cin, cout):
    """Deterministic init matching Conv2d default (uniform +/- 1/sqrt(fan_in))."""
    kw, kb = jax.random.split(key)
    fan_in = cin * 9
    bound = 1.0 / jnp.sqrt(jnp.float32(fan_in))
    weight = jax.random.uniform(kw, (cout, cin, 3, 3), jnp.float32, -bound, bound)
    bias = jax.random.uniform(kb, (cout,), jnp.float32, -bound, bound)
    return weight, bias


def make_conv_block_params(key, in_channels, out_channels, num_convs):
    keys = jax.random.split(key, num_convs)
    params, cin = [], in_channels
    for i in range(num_convs):
        params.append(init_conv_params(keys[i], cin, out_channels))
        cin = out_channels
    return params


def pack_conv_params(params):
    """Pre-pack torch-layout (Cout, Cin, 3, 3) weights once, outside the forward path.

    layer 0 : (K0p, Coutp) bf16, K0p = round_up(9*Cin, 16)   (matches wrapper im2col)
    layer l : (9*Coutp, Coutp) bf16                          (matches in-kernel patch)
    bias    : (1, Coutp) f32.  All padding is zero, so padded channels stay exactly 0
    through bias + LeakyReLU and through the next layer's (zero) weight rows.
    """
    packed = []
    for li, (weight, bias) in enumerate(params):
        cout, cin = int(weight.shape[0]), int(weight.shape[1])
        coutp = _lane_pad(cout)
        w_t = jnp.transpose(weight, (2, 3, 1, 0))            # (ky, kx, cin, cout)
        if li == 0:
            k0p = _round_up(9 * cin, 16)                     # bf16 sublane packing
            w_t = w_t.reshape(9 * cin, cout)
            w_t = jnp.pad(w_t, ((0, k0p - 9 * cin), (0, coutp - cout)))
        else:
            cinp = _lane_pad(cin)                            # == previous layer's Coutp
            w_t = jnp.pad(w_t, ((0, 0), (0, 0), (0, cinp - cin), (0, coutp - cout)))
            w_t = w_t.reshape(9 * cinp, coutp)
        b_p = jnp.pad(bias, (0, coutp - cout)).reshape(1, coutp).astype(jnp.float32)
        packed.append((w_t.astype(jnp.bfloat16), b_p, cout))
    return packed


# ---------------- layer-0 im2col (wrapper, one fused XLA pass) ----------------
def _layer0_im2col(x_nhwc, k0p):
    """Stride-2 / pad-1 im2col of the raw input -> (N, Hout*Wout, K0p) bf16.
    ~1.1x the raw input bytes (4x spatial decimation), any Cin."""
    n, h, w, cin = x_nhwc.shape
    hout = (h - 1) // 2 + 1
    wout = (w - 1) // 2 + 1
    xp = jnp.pad(x_nhwc, ((0, 0), (1, 1), (1, 1), (0, 0))).astype(jnp.bfloat16)
    pieces = [xp[:, ky:ky + 2 * hout:2, kx:kx + 2 * wout:2, :]
              for ky in range(3) for kx in range(3)]
    patches = jnp.concatenate(pieces, axis=-1)               # (N, Hout, Wout, 9*Cin)
    patches = jnp.pad(patches, ((0, 0), (0, 0), (0, 0), (0, k0p - 9 * cin)))
    return patches.reshape(n, hout * wout, k0p), hout, wout


# ---------------- ConvBlock forward --------------------------------------------
def conv_block_forward(x_nchw, packed_params, out_dtype=jnp.float32):
    """x_nchw: (N, Cin, H, W) -> (N, Cout, ceil(H/2), ceil(W/2)).
    Pass out_dtype=jnp.bfloat16 to halve the final (lane-padded) writeback when the
    consumer does not need f32."""
    x = jnp.transpose(x_nchw, (0, 2, 3, 1))                  # NCHW -> NHWC
    k0p = packed_params[0][0].shape[0]
    x0, hout, wout = _layer0_im2col(x, k0p)
    y = conv_block_pallas(x0, packed_params, hout, wout, out_dtype)
    y = y[..., :packed_params[-1][2]]                        # drop lane padding once
    return jnp.transpose(y, (0, 3, 1, 2))                    # NHWC -> NCHW


# ---------------- reference (for sanity check) ---------------------------------
def _ref_forward(x_nchw, params):
    x = x_nchw
    strides = [2] + [1] * (len(params) - 1)
    for (w, b), s in zip(params, strides):
        y = lax.conv_general_dilated(
            x, w, window_strides=(s, s), padding=((1, 1), (1, 1)),
            dimension_numbers=("NCHW", "OIHW", "NCHW"))
        y = y + b.reshape(1, -1, 1, 1)
        x = jnp.where(y >= 0, y, NEG_SLOPE * y)
    return x


if __name__ == "__main__":
    key = jax.random.PRNGKey(0)
    k_x, k_p = jax.random.split(key)

    batch, in_channels, out_channels, spatial = 2, 4, 8, 16
    x = jax.random.normal(k_x, (batch, in_channels, spatial, spatial), jnp.float32)

    # num_convs=2 exercises the single-scratch path, num_convs=3 the ping-pong path.
    for num_convs in (2, 3):
        params = make_conv_block_params(k_p, in_channels, out_channels, num_convs)
        packed = pack_conv_params(params)
        fwd = jax.jit(lambda xx, p=packed: conv_block_forward(xx, p))
        out = jax.block_until_ready(fwd(x))
        ref = _ref_forward(x, params)
        assert out.shape == (batch, out_channels, spatial // 2, spatial // 2), out.shape
        # bf16 activations/weights with f32 accumulation -> loosened tolerance
        err = float(jnp.max(jnp.abs(out - ref)))
        assert jnp.allclose(out, ref, atol=5e-2, rtol=5e-2), err

    print("KERNEL_OK")
</pallas_src>

<mosaic_0001>
module attributes {stable_mosaic.version = 11 : i64} {
  func.func @_conv_block_kernel(%arg0: i32, %arg1: memref<1x64x48xbf16, #tpu.memory_space<vmem>>, %arg2: memref<48x128xbf16, #tpu.memory_space<vmem>>, %arg3: memref<1x128xf32, #tpu.memory_space<vmem>>, %arg4: memref<1152x128xbf16, #tpu.memory_space<vmem>>, %arg5: memref<1x128xf32, #tpu.memory_space<vmem>>, %arg6: memref<1x8x8x128xf32, #tpu.memory_space<vmem>>, %arg7: memref<10x10x128xbf16, #tpu.memory_space<vmem>>) attributes {dimension_semantics = [#tpu.dimension_semantics<parallel>], iteration_bounds = array<i64: 2>, scalar_prefetch = 0 : i64, scratch_operands = 1 : i64, tpu.core_type = #tpu.core_type<tc>, window_params = [{transform_indices = @transform_0, window_bounds = array<i64: 1, 64, 48>}, {pipeline_mode = #tpu.pipeline_mode<synchronous>, transform_indices = @transform_1, window_bounds = array<i64: 48, 128>}, {pipeline_mode = #tpu.pipeline_mode<synchronous>, transform_indices = @transform_2, window_bounds = array<i64: 1, 128>}, {pipeline_mode = #tpu.pipeline_mode<synchronous>, transform_indices = @transform_3, window_bounds = array<i64: 1152, 128>}, {pipeline_mode = #tpu.pipeline_mode<synchronous>, transform_indices = @transform_4, window_bounds = array<i64: 1, 128>}, {transform_indices = @transform_5, window_bounds = array<i64: 1, 8, 8, 128>}]} {
    %cst = arith.constant 0.000000e+00 : bf16
    %0 = vector.broadcast %cst : bf16 to vector<10x10x128xbf16>
    %c0 = arith.constant 0 : index
    %c0_0 = arith.constant 0 : index
    %c0_1 = arith.constant 0 : index
    %1 = vector.load %arg7[%c0, %c0_0, %c0_1] : memref<10x10x128xbf16, #tpu.memory_space<vmem>>, vector<10x10x128xbf16>
    tpu.vector_store %arg7[%c0, %c0_0, %c0_1], %0 {strides = array<i32>} : memref<10x10x128xbf16, #tpu.memory_space<vmem>>, vector<10x10x128xbf16>,
    %c0_2 = arith.constant 0 : index
    %c0_3 = arith.constant 0 : index
    %c0_4 = arith.constant 0 : index
    %2 = vector.load %arg1[%c0_2, %c0_3, %c0_4] : memref<1x64x48xbf16, #tpu.memory_space<vmem>>, vector<1x64x48xbf16>
    %3 = vector.shape_cast %2 : vector<1x64x48xbf16> to vector<64x48xbf16>
    %c0_5 = arith.constant 0 : index
    %c0_6 = arith.constant 0 : index
    %4 = vector.load %arg2[%c0_5, %c0_6] : memref<48x128xbf16, #tpu.memory_space<vmem>>, vector<48x128xbf16>
    %cst_7 = arith.constant dense<0.000000e+00> : vector<64x128xf32>
    %5 = tpu.matmul %3, %4, %cst_7 {dimension_numbers = #tpu.dot_dimension_numbers<[1], [0], [0], [1], [0, 0, 1, 1], [], []>} : vector<64x48xbf16>, vector<48x128xbf16>, vector<64x128xf32> -> vector<64x128xf32>
    %c0_8 = arith.constant 0 : index
    %c0_9 = arith.constant 0 : index
    %6 = vector.load %arg3[%c0_8, %c0_9] : memref<1x128xf32, #tpu.memory_space<vmem>>, vector<1x128xf32>
    %7 = vector.broadcast %6 : vector<1x128xf32> to vector<64x128xf32>
    %8 = arith.addf %5, %7 : vector<64x128xf32>
    %cst_10 = arith.constant 0.000000e+00 : f32
    %9 = vector.broadcast %cst_10 : f32 to vector<64x128xf32>
    %10 = arith.cmpf oge, %8, %9 : vector<64x128xf32>
    %cst_11 = arith.constant 0.00999999977 : f32
    %11 = vector.broadcast %cst_11 : f32 to vector<64x128xf32>
    %12 = arith.mulf %11, %8 : vector<64x128xf32>
    %13 = arith.select %10, %8, %12 : vector<64x128xi1>, vector<64x128xf32>
    %14 = vector.shape_cast %13 : vector<64x128xf32> to vector<8x8x128xf32>
    %15 = arith.truncf %14 : vector<8x8x128xf32> to vector<8x8x128xbf16>
    %c1 = arith.constant 1 : index
    %c1_12 = arith.constant 1 : index
    %c0_13 = arith.constant 0 : index
    %16 = vector.load %arg7[%c1, %c1_12, %c0_13] : memref<10x10x128xbf16, #tpu.memory_space<vmem>>, vector<8x8x128xbf16>
    tpu.vector_store %arg7[%c1, %c1_12, %c0_13], %15 {strides = array<i32>} : memref<10x10x128xbf16, #tpu.memory_space<vmem>>, vector<8x8x128xbf16>,
    %c0_14 = arith.constant 0 : index
    %c0_15 = arith.constant 0 : index
    %c0_16 = arith.constant 0 : index
    %17 = vector.load %arg7[%c0_14, %c0_15, %c0_16] : memref<10x10x128xbf16, #tpu.memory_space<vmem>>, vector<8x8x128xbf16>
    %c0_17 = arith.constant 0 : index
    %c1_18 = arith.constant 1 : index
    %c0_19 = arith.constant 0 : index
    %18 = vector.load %arg7[%c0_17, %c1_18, %c0_19] : memref<10x10x128xbf16, #tpu.memory_space<vmem>>, vector<8x8x128xbf16>
    %c0_20 = arith.constant 0 : index
    %c2 = arith.constant 2 : index
    %c0_21 = arith.constant 0 : index
    %19 = vector.load %arg7[%c0_20, %c2, %c0_21] : memref<10x10x128xbf16, #tpu.memory_space<vmem>>, vector<8x8x128xbf16>
    %c1_22 = arith.constant 1 : index
    %c0_23 = arith.constant 0 : index
    %c0_24 = arith.constant 0 : index
    %20 = vector.load %arg7[%c1_22, %c0_23, %c0_24] : memref<10x10x128xbf16, #tpu.memory_space<vmem>>, vector<8x8x128xbf16>
    %c1_25 = arith.constant 1 : index
    %c1_26 = arith.constant 1 : index
    %c0_27 = arith.constant 0 : index
    %21 = vector.load %arg7[%c1_25, %c1_26, %c0_27] : memref<10x10x128xbf16, #tpu.memory_space<vmem>>, vector<8x8x128xbf16>
    %c1_28 = arith.constant 1 : index
    %c2_29 = arith.constant 2 : index
    %c0_30 = arith.constant 0 : index
    %22 = vector.load %arg7[%c1_28, %c2_29, %c0_30] : memref<10x10x128xbf16, #tpu.memory_space<vmem>>, vector<8x8x128xbf16>
    %c2_31 = arith.constant 2 : index
    %c0_32 = arith.constant 0 : index
    %c0_33 = arith.constant 0 : index
    %23 = vector.load %arg7[%c2_31, %c0_32, %c0_33] : memref<10x10x128xbf16, #tpu.memory_space<vmem>>, vector<8x8x128xbf16>
    %c2_34 = arith.constant 2 : index
    %c1_35 = arith.constant 1 : index
    %c0_36 = arith.constant 0 : index
    %24 = vector.load %arg7[%c2_34, %c1_35, %c0_36] : memref<10x10x128xbf16, #tpu.memory_space<vmem>>, vector<8x8x128xbf16>
    %c2_37 = arith.constant 2 : index
    %c2_38 = arith.constant 2 : index
    %c0_39 = arith.constant 0 : index
    %25 = vector.load %arg7[%c2_37, %c2_38, %c0_39] : memref<10x10x128xbf16, #tpu.memory_space<vmem>>, vector<8x8x128xbf16>
    %26 = tpu.concatenate %17, %18, %19, %20, %21, %22, %23, %24, %25 in 2 : vector<8x8x128xbf16>, vector<8x8x128xbf16>, vector<8x8x128xbf16>, vector<8x8x128xbf16>, vector<8x8x128xbf16>, vector<8x8x128xbf16>, vector<8x8x128xbf16>, vector<8x8x128xbf16>, vector<8x8x128xbf16> -> vector<8x8x1152xbf16>
    %27 = vector.shape_cast %26 : vector<8x8x1152xbf16> to vector<64x1152xbf16>
    %c0_40 = arith.constant 0 : index
    %c0_41 = arith.constant 0 : index
    %28 = vector.load %arg4[%c0_40, %c0_41] : memref<1152x128xbf16, #tpu.memory_space<vmem>>, vector<1152x128xbf16>
    %cst_42 = arith.constant dense<0.000000e+00> : vector<64x128xf32>
    %29 = tpu.matmul %27, %28, %cst_42 {dimension_numbers = #tpu.dot_dimension_numbers<[1], [0], [0], [1], [0, 0, 1, 1], [], []>} : vector<64x1152xbf16>, vector<1152x128xbf16>, vector<64x128xf32> -> vector<64x128xf32>
    %c0_43 = arith.constant 0 : index
    %c0_44 = arith.constant 0 : index
    %30 = vector.load %arg5[%c0_43, %c0_44] : memref<1x128xf32, #tpu.memory_space<vmem>>, vector<1x128xf32>
    %31 = vector.broadcast %30 : vector<1x128xf32> to vector<64x128xf32>
    %32 = arith.addf %29, %31 : vector<64x128xf32>
    %cst_45 = arith.constant 0.000000e+00 : f32
    %33 = vector.broadcast %cst_45 : f32 to vector<64x128xf32>
    %34 = arith.cmpf oge, %32, %33 : vector<64x128xf32>
    %cst_46 = arith.constant 0.00999999977 : f32
    %35 = vector.broadcast %cst_46 : f32 to vector<64x128xf32>
    %36 = arith.mulf %35, %32 : vector<64x128xf32>
    %37 = arith.select %34, %32, %36 : vector<64x128xi1>, vector<64x128xf32>
    %38 = vector.shape_cast %37 : vector<64x128xf32> to vector<8x8x128xf32>
    %c0_47 = arith.constant 0 : index
    %c0_48 = arith.constant 0 : index
    %c0_49 = arith.constant 0 : index
    %c0_50 = arith.constant 0 : index
    %39 = vector.load %arg6[%c0_47, %c0_48, %c0_49, %c0_50] : memref<1x8x8x128xf32, #tpu.memory_space<vmem>>, vector<1x8x8x128xf32>
    %40 = vector.shape_cast %39 : vector<1x8x8x128xf32> to vector<8x8x128xf32>
    %41 = vector.shape_cast %38 : vector<8x8x128xf32> to vector<1x8x8x128xf32>
    tpu.vector_store %arg6[%c0_47, %c0_48, %c0_49, %c0_50], %41 {strides = array<i32>} : memref<1x8x8x128xf32, #tpu.memory_space<vmem>>, vector<1x8x8x128xf32>,
    return
  }
  func.func @transform_0(%arg0: i32) -> (i32, i32, i32) {
    %c0_i32 = arith.constant 0 : i32
    %c0_i32_0 = arith.constant 0 : i32
    %c0_i32_1 = arith.constant 0 : i32
    return %arg0, %c0_i32, %c0_i32_0 : i32, i32, i32
  }
  func.func @transform_1(%arg0: i32) -> (i32, i32) {
    %c0_i32 = arith.constant 0 : i32
    %c0_i32_0 = arith.constant 0 : i32
    %c0_i32_1 = arith.constant 0 : i32
    return %c0_i32, %c0_i32_0 : i32, i32
  }
  func.func @transform_2(%arg0: i32) -> (i32, i32) {
    %c0_i32 = arith.constant 0 : i32
    %c0_i32_0 = arith.constant 0 : i32
    %c0_i32_1 = arith.constant 0 : i32
    return %c0_i32, %c0_i32_0 : i32, i32
  }
  func.func @transform_3(%arg0: i32) -> (i32, i32) {
    %c0_i32 = arith.constant 0 : i32
    %c0_i32_0 = arith.constant 0 : i32
    %c0_i32_1 = arith.constant 0 : i32
    return %c0_i32, %c0_i32_0 : i32, i32
  }
  func.func @transform_4(%arg0: i32) -> (i32, i32) {
    %c0_i32 = arith.constant 0 : i32
    %c0_i32_0 = arith.constant 0 : i32
    %c0_i32_1 = arith.constant 0 : i32
    return %c0_i32, %c0_i32_0 : i32, i32
  }
  func.func @transform_5(%arg0: i32) -> (i32, i32, i32, i32) {
    %c0_i32 = arith.constant 0 : i32
    %c0_i32_0 = arith.constant 0 : i32
    %c0_i32_1 = arith.constant 0 : i32
    %c0_i32_2 = arith.constant 0 : i32
    return %arg0, %c0_i32, %c0_i32_0, %c0_i32_1 : i32, i32, i32, i32
  }
}

</mosaic_0001>

<bundles_post_ra>
// kernel: _lambda_.1
= control target key start
LH: loop header
LB: loop body
LE: loop exit
PB: predicated region body
PF: predicated region fallthrough
CT: control target
= control target key end

     0   :  { %s2748_s18 = smov 0   ;;  %s3254_s0 = inlined_call_operand.vmem [shape: bf16[2,64,48], index: 0, kind: input, shape index: {}]   ;;  %s3255_s1 = inlined_call_operand.vmem [shape: bf16[48,128], index: 1, kind: input, shape index: {}]   ;;  %s3256_s2 = inlined_call_operand.vmem [shape: f32[1,128], index: 2, kind: input, shape index: {}]   ;;  %s3257_s3 = inlined_call_operand.vmem [shape: bf16[1152,128], index: 3, kind: input, shape index: {}]   ;;  %s3258_s4 = inlined_call_operand.vmem [shape: f32[1,128], index: 4, kind: input, shape index: {}]   ;;  %s3259_s5 = inlined_call_operand.vmem [shape: f32[2,8,8,128], index: 5, kind: output, shape index: {}]  }
   0x1 LB: > { %s2146_s19 = sadd.s32 4294967295, %s2715_s18   ;;  %p2150_p0 = scmp.ge.s32.totalorder %s2715_s18, 1  ;;  %s2715_s18 = sphi %s2748_s18, %s15_s18  }
   0x2   : > { %p187_p1 = scmp.lt.s32.totalorder %s2715_s18, 3 }
   0x4   : > { %p188_p2 = pnand %p2150_p0, %p187_p1 }
   0x5   : > { %v2570_v0 = vld [vmem:[%s3255_s1] sm:$0xff] (!%p188_p2)   ;;  %p215_p3 = scmp.lt.s32.totalorder (!%p188_p2), %s2146_s19, 1  ;;  %v2571_v1 = vld [vmem:[%s3255_s1 + $0x8] sm:$0xff] (!%p188_p2)   ;;  %vm305_vm0 = vcmask (!%p188_p2), 392192   ;;  %v2572_v2 = vld [vmem:[%s3255_s1 + $0x10] sm:$0xff] (!%p188_p2)   ;;  %v2717_v3 = vmov (!%p188_p2), 0  }
   0x6   : > { %191 = sbr.rel (%p188_p2) target bundleno = 564 (0x234), region = 40  ;;  %2523 = vmatprep.subr.bf16.mxu0 (!%p188_p2), %v2570_v0  ;;  %232 = vst [vmem:[#allocation2 + $0x18] sm:$0xf] (!%p188_p2), %v2717_v3  ;;  %233 = vst [vmem:[#allocation2 + $0x1c] sm:$0x1] (!%p188_p2), %v2717_v3  ;;  %v2577_v5 = vld [vmem:[%s3257_s3 + $0xc0] sm:$0xff] (!%p188_p2)  }
   0x7   : > { %2524 = vmatpush3.bf16.msra.mxu0 (!%p188_p2), %v2570_v0  ;;  %226 = vst [vmem:[#allocation2] sm:$0xf] (!%p188_p2), %v2717_v3  ;;  %227 = vst [vmem:[#allocation2 + $0x4] sm:$0x1] (!%p188_p2), %v2717_v3  ;;  %v2578_v8 = vld [vmem:[%s3257_s3 + $0x80] sm:$0xff] (!%p188_p2)   ;;  %v2580_v10 = vld [vmem:[%s3257_s3 + $0xc8] sm:$0xff] (!%p188_p2)  }
   0x8   : > { %2525 = vmatprep.subr.bf16.mxu0 (!%p188_p2), %v2571_v1  ;;  %228 = vst [vmem:[#allocation2 + $0x8] sm:$0xf] (!%p188_p2), %v2717_v3  ;;  %229 = vst [vmem:[#allocation2 + $0xc] sm:$0x1] (!%p188_p2), %v2717_v3  ;;  %v2579_v11 = vld [vmem:[%s3257_s3 + $0x40] sm:$0xff] (!%p188_p2)   ;;  %v2582_v12 = vld [vmem:[%s3257_s3 + $0x88] sm:$0xff] (!%p188_p2)  }
   0x9   : > { %230 = vst [vmem:[#allocation2 + $0x10] sm:$0xf] (!%p188_p2), %v2717_v3  ;;  %231 = vst [vmem:[#allocation2 + $0x14] sm:$0x1] (!%p188_p2), %v2717_v3  ;;  %v2581_v13 = vld [vmem:[%s3257_s3] sm:$0xff] (!%p188_p2)   ;;  %2351 = vmatprep.subr.bf16.mxu1 (!%p188_p2), %v2579_v11  ;;  %v2584_v14 = vld [vmem:[%s3257_s3 + $0xd0] sm:$0xff] (!%p188_p2)  }
   0xa   : > { %234 = vst [vmem:[#allocation2 + $0x20] sm:$0xf] (!%p188_p2), %v2717_v3  ;;  %235 = vst [vmem:[#allocation2 + $0x24] sm:$0x1] (!%p188_p2), %v2717_v3  ;;  %2352 = vmatpush3.bf16.msra.mxu1 (!%p188_p2), %v2581_v13  ;;  %v2583_v15 = vld [vmem:[%s3257_s3 + $0x48] sm:$0xff] (!%p188_p2)   ;;  %v2586_v16 = vld [vmem:[%s3257_s3 + $0x90] sm:$0xff] (!%p188_p2)  }
   0xb   : > { %236 = vst [vmem:[#allocation2 + $0x28] sm:$0xf] (!%p188_p2), %v2717_v3  ;;  %237 = vst [vmem:[#allocation2 + $0x2c] sm:$0x1] (!%p188_p2), %v2717_v3  ;;  %2526 = vmatpush3.bf16.msra.mxu0 (!%p188_p2), %v2571_v1  ;;  %v2585_v17 = vld [vmem:[%s3257_s3 + $0x8] sm:$0xff] (!%p188_p2)   ;;  %2353 = vmatprep.subr.bf16.mxu1 (!%p188_p2), %v2583_v15  ;;  %v2588_v18 = vld [vmem:[%s3257_s3 + $0xd8] sm:$0xff] (!%p188_p2)  }
   0xc   : > { %238 = vst [vmem:[#allocation2 + $0x30] sm:$0xf] (!%p188_p2), %v2717_v3  ;;  %239 = vst [vmem:[#allocation2 + $0x34] sm:$0x1] (!%p188_p2), %v2717_v3  ;;  %2527 = vmatprep.subr.bf16.mxu0 (!%p188_p2), %v2572_v2  ;;  %v2587_v19 = vld [vmem:[%s3257_s3 + $0x50] sm:$0xff] (!%p188_p2)   ;;  %v2590_v20 = vld [vmem:[%s3257_s3 + $0x98] sm:$0xff] (!%p188_p2)  }
   0xd   : > { %s3265_s19 = smov (!%p215_p3, %s2146_s19), 1  ;;  %240 = vst [vmem:[#allocation2 + $0x38] sm:$0xf] %v2717_v3  ;;  %241 = vst [vmem:[#allocation2 + $0x3c] sm:$0x1] %v2717_v3  ;;  %v2589_v21 = vld [vmem:[%s3257_s3 + $0x10] sm:$0xff]  }
   0xe   : > { %s2334_s26 = sshll.u32 %s3265_s19, 5  ;;  %242 = vst [vmem:[#allocation2 + $0x40] sm:$0xf] %v2717_v3  ;;  %243 = vst [vmem:[#allocation2 + $0x44] sm:$0x1] %v2717_v3  ;;  %2354 = vmatpush3.bf16.msra.mxu1 %v2585_v17  ;;  %v2592_v22 = vld [vmem:[%s3257_s3 + $0xe0] sm:$0xff]  }
   0xf   : > { %244 = vst [vmem:[#allocation2 + $0x48] sm:$0xf] %v2717_v3  ;;  %245 = vst [vmem:[#allocation2 + $0x4c] sm:$0x1] %v2717_v3  ;;  %s219_s29 = scalar_lea.vmem %s3254_s0, %s2334_s26  ;;  %2528 = vmatpush3.bf16.msra.mxu0 %v2572_v2  ;;  %2355 = vmatprep.subr.bf16.mxu1 %v2587_v19  ;;  %v2591_v23 = vld [vmem:[%s3257_s3 + $0x58] sm:$0xff]   ;;  %v2594_v24 = vld [vmem:[%s3257_s3 + $0xa0] sm:$0xff]  }
  0x10   : > { %v2573_v4 = vld [vmem:[%s219_s29] sm:$0xff]   ;;  %v2574_v6 = vld [vmem:[%s219_s29 + $0x8] sm:$0xff]   ;;  %v2575_v7 = vld [vmem:[%s219_s29 + $0x10] sm:$0xff]   ;;  %2391 = vmatprep.subr.bf16.mxu0 %v2577_v5  ;;  %vm520_vm2 = vcmask 1043456   ;;  %vm521_vm4 = vsmask.f32 7938 }
  0x11   : > { %2529 = vmatprep.mubr.msk.bf16.mxu0 %vm305_vm0, %v2573_v4  ;;  %v2576_v9 = vld [vmem:[%s219_s29 + $0x18] sm:$0xff]   ;;  %v2596_v26 = vld [vmem:[%s3257_s3 + $0xe8] sm:$0xff]   ;;  %v2595_v27 = vld [vmem:[%s3257_s3 + $0x60] sm:$0xff]   ;;  %vm526_vm7 = vcmask 1040384   ;;  %vm527_vm8 = vsmask.f32 256 }
  0x12   : > { %2530 = vmatmul.mubr.msk.bf16.vlgmr.msra.gmra.mrb[0].mxu0 %vm305_vm0, %v2574_v6  ;;  %2356 = vmatpush3.bf16.msra.mxu1 %v2589_v21  ;;  %v2593_v25 = vld [vmem:[%s3257_s3 + $0x18] sm:$0xff]   ;;  %v2598_v28 = vld [vmem:[%s3257_s3 + $0xa8] sm:$0xff]   ;;  %v2597_v29 = vld [vmem:[%s3257_s3 + $0x20] sm:$0xff]   ;;  %s2335_s15 = sshll.u32 %s3265_s19, 6 }
  0x13   : > { %2533 = vmatprep.mubr.msk.bf16.mxu0 %vm305_vm0, %v2575_v7  ;;  %2392 = vmatpush3.bf16.msra.mxu0 %v2578_v8  ;;  %v2600_v30 = vld [vmem:[%s3257_s3 + $0xf0] sm:$0xff]   ;;  %v2599_v31 = vld [vmem:[%s3257_s3 + $0x68] sm:$0xff]   ;;  %v2604_v34 = vld [vmem:[%s3257_s3 + $0xf8] sm:$0xff]   ;;  %s3241_s20 = scalar_lea.vmem %s3259_s5, %s2335_s15 }
  0x14   : > { %2393 = vmatprep.subr.bf16.mxu0 %v2580_v10  ;;  %2357 = vmatprep.subr.bf16.mxu1 %v2591_v23  ;;  %v2602_v32 = vld [vmem:[%s3257_s3 + $0xb0] sm:$0xff]   ;;  %v2601_v33 = vld [vmem:[%s3257_s3 + $0x28] sm:$0xff]   ;;  %v2606_v37 = vld [vmem:[%s3257_s3 + $0xb8] sm:$0xff]  }
  0x15   : > { %v2603_v35 = vld [vmem:[%s3257_s3 + $0x70] sm:$0xff]   ;;  %v2610_v38 = vld [vmem:[%s3257_s3 + $0x78] sm:$0xff]   ;;  %v2613_v39 = vld [vmem:[%s3257_s3 + $0x1c0] sm:$0xff]  }
  0x16   : > { %2358 = vmatpush3.bf16.msra.mxu1 %v2593_v25  ;;  %v2605_v36 = vld [vmem:[%s3257_s3 + $0x30] sm:$0xff]   ;;  %v2614_v40 = vld [vmem:[%s3257_s3 + $0x38] sm:$0xff]   ;;  %v2621_v41 = vld [vmem:[%s3257_s3 + $0x140] sm:$0xff]  }
  0x17   : > { %2394 = vmatpush3.bf16.msra.mxu0 %v2582_v12  ;;  %2359 = vmatprep.subr.bf16.mxu1 %v2595_v27  ;;  %v2880_v42 = vld [vmem:[%s3256_s2] ss:$0 sm:$0xff]  ;;  %v538_v1 = vld [vmem:[#allocation2 + $0x18] sm:$0xf]  ;;  %v541_v2 = vld [vmem:[#allocation2 + $0x1c] sm:$0x1] }
  0x18   : > { %2395 = vmatprep.subr.bf16.mxu0 %v2584_v14  ;;  %vm2889_vm9 = vmand %vm520_vm2, %vm521_vm4  ;;  %v523_v10 = vld [vmem:[#allocation2 + $0x8] sm:$0xf]  ;;  %v529_v11 = vld [vmem:[#allocation2 + $0xc] sm:$0x1] }
  0x19   : > { %vm2896_vm10 = vmand %vm526_vm7, %vm527_vm8 }
  0x1a   : > { %2534 = vmatmul.mubr.msk.bf16.gmra.mrb[4].mxu0 %vm305_vm0, %v2576_v9  ;;  %2360 = vmatpush3.bf16.msra.mxu1 %v2597_v29  ;;  %v2622_v9 = vld [vmem:[%s3257_s3 + $0x1c8] sm:$0xff]  }
  0x1b   : > { %2396 = vmatpush3.bf16.msra.mxu0 %v2586_v16  ;;  %2361 = vmatprep.subr.bf16.mxu1 %v2599_v31 }
  0x1c   : > { %2397 = vmatprep.subr.bf16.mxu0 %v2588_v18 }
  0x1e   : > { %2362 = vmatpush3.bf16.msra.mxu1 %v2601_v33 }
  0x1f   : > { %2398 = vmatpush3.bf16.msra.mxu0 %v2590_v20  ;;  %2363 = vmatprep.subr.bf16.mxu1 %v2603_v35  ;;  %v535_v35 = vld [vmem:[#allocation2 + $0x14] sm:$0x1] }
  0x20   : > { %2399 = vmatprep.subr.bf16.mxu0 %v2592_v22 }
  0x22   : > { %2364 = vmatpush3.bf16.msra.mxu1 %v2605_v36 }
  0x23   : > { %2400 = vmatpush3.bf16.msra.mxu0 %v2594_v24  ;;  %2365 = vmatprep.subr.bf16.mxu1 %v2610_v38  ;;  %v544_v24 = vld [vmem:[#allocation2 + $0x20] sm:$0xf] }
  0x24   : > { %2401 = vmatprep.subr.bf16.mxu0 %v2596_v26 }
  0x26   : > { %2366 = vmatpush3.bf16.msra.mxu1 %v2614_v40 }
  0x27   : > { %2402 = vmatpush3.bf16.msra.mxu0 %v2598_v28  ;;  %2431 = vmatprep.subr.bf16.mxu1 %v2621_v41  ;;  %v547_v28 = vld [vmem:[#allocation2 + $0x24] sm:$0x1] }
  0x28   : > { %2403 = vmatprep.subr.bf16.mxu0 %v2600_v30 }
  0x2b   : > { %2404 = vmatpush3.bf16.msra.mxu0 %v2602_v32 }
  0x2c   : > { %2405 = vmatprep.subr.bf16.mxu0 %v2604_v34  ;;  %v532_v34 = vld [vmem:[#allocation2 + $0x10] sm:$0xf] }
  0x2f   : > { %2406 = vmatpush3.bf16.msra.mxu0 %v2606_v37 }
  0x30   : > { %2471 = vmatprep.subr.bf16.mxu0 %v2613_v39 }
  0xe5   : > { %v2531_v43 = vpop.f32.mrb[0].mxu0 }
  0xe6   : > { %v361_v44 = vadd.f32 %v2531_v43, %v2880_v42  ;;  %v352_v45 = vpop.f32.mrb[1].mxu0 }
  0xe7   : > { %v353_v46 = vadd.f32 %v2880_v42, %v352_v45  ;;  %v2532_v47 = vpop.f32.mrb[2].mxu0 }
  0xe8   : > { %vm385_vm1 = vcmp.ge.f32.partialorder %v361_v44, 0.0  ;;  %v393_v48 = vmul.f32 0.01, %v361_v44  ;;  %v364_v49 = vadd.f32 %v2532_v47, %v2880_v42  ;;  %v355_v50 = vpop.f32.mrb[3].mxu0 }
  0xe9   : > { %vm383_vm3 = vcmp.ge.f32.partialorder %v353_v46, 0.0  ;;  %v391_v51 = vmul.f32 0.01, %v353_v46  ;;  %v356_v52 = vadd.f32 %v2880_v42, %v355_v50 }
  0xea   : > { %v401_v53 = vsel %vm385_vm1, %v361_v44, %v393_v48  ;;  %vm386_vm5 = vcmp.ge.f32.partialorder %v364_v49, 0.0  ;;  %v394_v54 = vmul.f32 0.01, %v364_v49 }
  0xeb   : > { %v2338_v55 = vpack.c.bf16 %v401_v53, %v401_v53  ;;  %v399_v56 = vsel %vm383_vm3, %v353_v46, %v391_v51  ;;  %vm384_vm6 = vcmp.ge.f32.partialorder %v356_v52, 0.0  ;;  %v392_v57 = vmul.f32 0.01, %v356_v52 }
  0xec   : > { %v2336_v58 = vpack.c.bf16 %v399_v56, %v399_v56  ;;  %v402_v59 = vsel %vm386_vm5, %v364_v49, %v394_v54  ;;  %v582_v54 = vld [vmem:[#allocation2 + $0x4] sm:$0x1] }
  0xed   : > { %v456_v60 = vshrl.u32 %v2338_v55, 16  ;;  %v459_v61 = vshll.u32 %v2338_v55, 16  ;;  %v2339_v62 = vpack.c.bf16 %v402_v59, %v402_v59  ;;  %v400_v63 = vsel %vm384_vm6, %v356_v52, %v392_v57  ;;  %v2535_v0 = vpop.f32.mrb[4].mxu0  ;;  %v590_v55 = vld [vmem:[#allocation2] sm:$0xe] }
  0xee   : > { %v440_v3 = vshrl.u32 %v2336_v58, 16  ;;  %v443_v4 = vshll.u32 %v2336_v58, 16  ;;  %v2337_v5 = vpack.c.bf16 %v400_v63, %v400_v63  ;;  %v377_v6 = vadd.f32 %v2535_v0, %v2880_v42  ;;  %v368_v7 = vpop.f32.mrb[5].mxu0  ;;  %v565_v63 = vld [vmem:[#allocation2 + $0x3c] sm:$0x1] }
  0xef   : > { %v458_v8 = vrot.slane %v456_v60, 7  ;;  %v464_v12 = vshrl.u32 %v2339_v62, 16  ;;  %v467_v13 = vshll.u32 %v2339_v62, 16  ;;  %v369_v14 = vadd.f32 %v2880_v42, %v368_v7  ;;  %v2536_v15 = vpop.f32.mrb[6].mxu0  ;;  %v562_v62 = vld [vmem:[#allocation2 + $0x38] sm:$0xf] }
  0xf0   : > { %v442_v17 = vrot.slane %v440_v3, 7  ;;  %v448_v18 = vshrl.u32 %v2337_v5, 16  ;;  %v451_v19 = vshll.u32 %v2337_v5, 16  ;;  %vm389_vm11 = vcmp.ge.f32.partialorder %v377_v6, 0.0  ;;  %v371_v20 = vpop.f32.mrb[7].mxu0 }
  0xf1   : > { %v461_v21 = vor.u32 %v459_v61, %v458_v8  ;;  %v462_v22 = vrot.slane %v458_v8, 4  ;;  %v466_v23 = vrot.slane %v464_v12, 7  ;;  %v397_v25 = vmul.f32 0.01, %v377_v6  ;;  %v2920_v61 = vld [vmem:[#allocation2] sm:$0xf] }
  0xf2   : > { %v445_v26 = vor.u32 %v443_v4, %v442_v17  ;;  %v446_v27 = vrot.slane %v442_v17, 4  ;;  %v450_v29 = vrot.slane %v448_v18, 7  ;;  %vm387_vm12 = vcmp.ge.f32.partialorder %v369_v14, 0.0  ;;  %v550_v5 = vld [vmem:[#allocation2 + $0x28] sm:$0xf] }
  0xf3   : > { %v539_v30 = vsel %vm2889_vm9, %v461_v21, %v538_v1  ;;  %v542_v31 = vsel %vm2896_vm10, %v462_v22, %v541_v2  ;;  %v469_v32 = vor.u32 %v467_v13, %v466_v23  ;;  %v470_v33 = vrot.slane %v466_v23, 4 }
  0xf4   : > { %540 = vst [vmem:[#allocation2 + $0x18] sm:$0xf] %v539_v30  ;;  %543 = vst [vmem:[#allocation2 + $0x1c] sm:$0x1] %v542_v31  ;;  %v524_v36 = vsel %vm2889_vm9, %v445_v26, %v523_v10  ;;  %v530_v37 = vsel %vm2896_vm10, %v446_v27, %v529_v11  ;;  %v453_v38 = vor.u32 %v451_v19, %v450_v29  ;;  %v454_v39 = vrot.slane %v450_v29, 4 }
  0xf5   : > { %525 = vst [vmem:[#allocation2 + $0x8] sm:$0xf] %v524_v36  ;;  %531 = vst [vmem:[#allocation2 + $0xc] sm:$0x1] %v530_v37  ;;  %v545_v40 = vsel %vm2889_vm9, %v469_v32, %v544_v24  ;;  %v548_v41 = vsel %vm2896_vm10, %v470_v33, %v547_v28  ;;  %v405_v43 = vsel %vm389_vm11, %v377_v6, %v397_v25  ;;  %v395_v44 = vmul.f32 0.01, %v369_v14 }
  0xf6   : > { %546 = vst [vmem:[#allocation2 + $0x20] sm:$0xf] %v545_v40  ;;  %549 = vst [vmem:[#allocation2 + $0x24] sm:$0x1] %v548_v41  ;;  %v533_v45 = vsel %vm2889_vm9, %v453_v38, %v532_v34  ;;  %v536_v46 = vsel %vm2896_vm10, %v454_v39, %v535_v35  ;;  %v2342_v47 = vpack.c.bf16 %v405_v43, %v405_v43  ;;  %v553_v6 = vld [vmem:[#allocation2 + $0x2c] sm:$0x1] }
  0xf7   : > { %v380_v48 = vadd.f32 %v2536_v15, %v2880_v42  ;;  %534 = vst [vmem:[#allocation2 + $0x10] sm:$0xf] %v533_v45  ;;  %537 = vst [vmem:[#allocation2 + $0x14] sm:$0x1] %v536_v46  ;;  %v403_v49 = vsel %vm387_vm12, %v369_v14, %v395_v44  ;;  %v372_v50 = vadd.f32 %v2880_v42, %v371_v20  ;;  %v568_v27 = vld [vmem:[#allocation2 + $0x40] sm:$0xf] }
  0xf8   : > { %v488_v51 = vshrl.u32 %v2342_v47, 16  ;;  %v491_v52 = vshll.u32 %v2342_v47, 16  ;;  %v2340_v53 = vpack.c.bf16 %v403_v49, %v403_v49  ;;  %v2183_v8 = vcombine.low %v590_v55, %v582_v54  ;;  %v571_v28 = vld [vmem:[#allocation2 + $0x44] sm:$0x1]  ;;  %v556_v31 = vld [vmem:[#allocation2 + $0x30] sm:$0xf] }
  0xf9   : > { %vm390_vm13 = vcmp.ge.f32.partialorder %v380_v48, 0.0  ;;  %v398_v56 = vmul.f32 0.01, %v380_v48  ;;  %vm388_vm14 = vcmp.ge.f32.partialorder %v372_v50, 0.0  ;;  %v396_v57 = vmul.f32 0.01, %v372_v50 }
  0xfa   : > { %v490_v58 = vrot.slane %v488_v51, 7  ;;  %v472_v59 = vshrl.u32 %v2340_v53, 16  ;;  %v475_v60 = vshll.u32 %v2340_v53, 16  ;;  %v2923_v10 = vcombine.low %v2920_v61, %v582_v54  ;;  %v559_v32 = vld [vmem:[#allocation2 + $0x34] sm:$0x1]  ;;  %v2618_v45 = vld [vmem:[%s3257_s3 + $0x180] sm:$0xff]  }
  0xfb   : > { %v406_v0 = vsel %vm390_vm13, %v380_v48, %v398_v56  ;;  %v404_v1 = vsel %vm388_vm14, %v372_v50, %v396_v57  ;;  %v767_v34 = vrot.slane %v2183_v8, 1  ;;  %v2944_v43 = vld [vmem:[#allocation2 + $0x18] sm:$0xf] }
  0xfc   : > { %v493_v2 = vor.u32 %v491_v52, %v490_v58  ;;  %v494_v42 = vrot.slane %v490_v58, 4  ;;  %v474_v3 = vrot.slane %v472_v59, 7  ;;  %v2343_v4 = vpack.c.bf16 %v406_v0, %v406_v0  ;;  %v583_v17 = vld [vmem:[#allocation2 + $0xc] sm:$0x1]  ;;  %v591_v22 = vld [vmem:[#allocation2 + $0x8] sm:$0xe] }
  0xfd   : > { %v2341_v7 = vpack.c.bf16 %v404_v1, %v404_v1  ;;  %v2935_v25 = vld [vmem:[#allocation2 + $0x8] sm:$0xf]  ;;  %v2184_v33 = vcombine.low %v591_v22, %v583_v17  ;;  %v690_v35 = vshll.u32 %v2923_v10, 16  ;;  %v2940_v40 = vld [vmem:[#allocation2 + $0x20] sm:$0xf]  ;;  %v688_v57 = vshrl.u32 %v2923_v10, 16 }
  0xfe   : > { %v563_v11 = vsel %vm2889_vm9, %v493_v2, %v562_v62  ;;  %v566_v12 = vsel %vm2896_vm10, %v494_v42, %v565_v63  ;;  %v477_v13 = vor.u32 %v475_v60, %v474_v3  ;;  %v478_v14 = vrot.slane %v474_v3, 4  ;;  %v2929_v15 = vld [vmem:[#allocation2 + $0x10] sm:$0xf]  ;;  %v2942_v41 = vld [vmem:[#allocation2 + $0x8] sm:$0xf] }
  0xff   : > { %564 = vst [vmem:[#allocation2 + $0x38] sm:$0xf] %v563_v11  ;;  %567 = vst [vmem:[#allocation2 + $0x3c] sm:$0x1] %v566_v12  ;;  %v496_v18 = vshrl.u32 %v2343_v4, 16  ;;  %v499_v19 = vshll.u32 %v2343_v4, 16  ;;  %v2227_v30 = vcombine.low %v2935_v25, %v2929_v15  ;;  %v2176_v59 = vcombine.low %v2942_v41, %v583_v17 }
 0x100   : > { %v480_v20 = vshrl.u32 %v2341_v7, 16  ;;  %v483_v21 = vshll.u32 %v2341_v7, 16  ;;  %v551_v23 = vsel %vm2889_vm9, %v477_v13, %v550_v5  ;;  %v554_v24 = vsel %vm2896_vm10, %v478_v14, %v553_v6  ;;  %v2949_v46 = vld [vmem:[#allocation2 + $0x10] sm:$0xf]  ;;  %v584_v47 = vld [vmem:[#allocation2 + $0x14] sm:$0x1] }
 0x101   : > { %552 = vst [vmem:[#allocation2 + $0x28] sm:$0xf] %v551_v23  ;;  %555 = vst [vmem:[#allocation2 + $0x2c] sm:$0x1] %v554_v24  ;;  %v498_v26 = vrot.slane %v496_v18, 7  ;;  %1831 = vmatprep.mubr.bf16.mxu0 %v2227_v30  ;;  %v768_v44 = vrot.slane %v2184_v33, 1  ;;  %v2177_v60 = vcombine.low %v2949_v46, %v584_v47 }
 0x102   : > { %v482_v29 = vrot.slane %v480_v20, 7  ;;  %v585_v52 = vld [vmem:[#allocation2 + $0x1c] sm:$0x1]  ;;  %v592_v53 = vld [vmem:[#allocation2 + $0x10] sm:$0xe]  ;;  %v692_v58 = vrot.slane %v690_v35, 1 }
 0x103   : > { %v501_v36 = vor.u32 %v499_v19, %v498_v26  ;;  %v502_v37 = vrot.slane %v498_v26, 4  ;;  %v593_v54 = vld [vmem:[#allocation2 + $0x18] sm:$0xe]  ;;  %v2226_v55 = vcombine.low %v767_v34, %v768_v44  ;;  %v2625_v62 = vld [vmem:[%s3257_s3 + $0x188] sm:$0xff]   ;;  %v2178_v63 = vcombine.low %v2944_v43, %v585_v52  ;;  %v2973_v2 = vld [vmem:[#allocation2 + $0x20] sm:$0xf] }
 0x104   : > { %v485_v38 = vor.u32 %v483_v21, %v482_v29  ;;  %v486_v39 = vrot.slane %v482_v29, 4  ;;  %v2959_v56 = vld [vmem:[#allocation2 + $0x18] sm:$0xf]  ;;  %v2185_v0 = vcombine.low %v592_v53, %v584_v47  ;;  %v2186_v1 = vcombine.low %v593_v54, %v585_v52  ;;  %v2975_v42 = vld [vmem:[#allocation2 + $0x24] sm:$0x1]  ;;  %v2631_v12 = vld [vmem:[%s3257_s3 + $0x1d0] sm:$0xff]  }
 0x105   : > { %v569_v48 = vsel %vm2889_vm9, %v501_v36, %v568_v27  ;;  %v572_v49 = vsel %vm2896_vm10, %v502_v37, %v571_v28  ;;  %v2236_v16 = vcombine.low %v2959_v56, %v2940_v40  ;;  %1832 = vmatmul.mubr.bf16.vlgmr.msra.gmra.mrb[8].mxu0 %v2226_v55  ;;  %v697_v3 = vshll.u32 %v2176_v59, 16  ;;  %v594_v19 = vld [vmem:[#allocation2 + $0x20] sm:$0xe]  ;;  %v2636_v33 = vld [vmem:[%s3257_s3 + $0x190] sm:$0xff]   ;;  %v2630_v37 = vld [vmem:[%s3257_s3 + $0x148] sm:$0xff]  }
 0x106   : > { %v557_v50 = vsel %vm2889_vm9, %v485_v38, %v556_v31  ;;  %v560_v51 = vsel %vm2896_vm10, %v486_v39, %v559_v32  ;;  %570 = vst [vmem:[#allocation2 + $0x40] sm:$0xf] %v569_v48  ;;  %573 = vst [vmem:[#allocation2 + $0x44] sm:$0x1] %v572_v49  ;;  %2472 = vmatpush3.bf16.msra.mxu0 %v2618_v45  ;;  %v704_v4 = vshll.u32 %v2177_v60, 16  ;;  %v695_v8 = vshrl.u32 %v2176_v59, 16 }
 0x107   : > { %558 = vst [vmem:[#allocation2 + $0x30] sm:$0xf] %v557_v50  ;;  %561 = vst [vmem:[#allocation2 + $0x34] sm:$0x1] %v560_v51  ;;  %1839 = vmatprep.mubr.bf16.mxu0 %v2236_v16  ;;  %v693_v7 = vor.u32 %v692_v58, %v688_v57  ;;  %2473 = vmatprep.subr.bf16.mxu0 %v2622_v9  ;;  %v711_v10 = vshll.u32 %v2178_v63, 16  ;;  %v769_v11 = vrot.slane %v2185_v0, 1 }
 0x108   : > { %v2977_v5 = vld [vmem:[#allocation2 + $0x28] sm:$0xf]  ;;  %v587_v6 = vld [vmem:[#allocation2 + $0x2c] sm:$0x1]  ;;  %v699_v13 = vrot.slane %v697_v3, 1  ;;  %v702_v14 = vshrl.u32 %v2177_v60, 16  ;;  %v2179_v18 = vcombine.low %v2973_v2, %v2975_v42  ;;  %v2187_v35 = vcombine.low %v594_v19, %v2975_v42 }
 0x109   : > { %v706_v17 = vrot.slane %v704_v4, 1  ;;  %v709_v20 = vshrl.u32 %v2178_v63, 16  ;;  %v713_v21 = vrot.slane %v711_v10, 1  ;;  %v770_v22 = vrot.slane %v2186_v1, 1  ;;  %v595_v24 = vld [vmem:[#allocation2 + $0x28] sm:$0xe] }
 0x10a   : > { %v2180_v23 = vcombine.low %v2977_v5, %v587_v6  ;;  %v700_v26 = vor.u32 %v699_v13, %v695_v8  ;;  %2474 = vmatpush3.bf16.msra.mxu0 %v2625_v62  ;;  %v2624_v29 = vld [vmem:[%s3257_s3 + $0x100] sm:$0xff]   ;;  %v2990_v32 = vld [vmem:[#allocation2 + $0x28] sm:$0xf]  ;;  %v718_v34 = vshll.u32 %v2179_v18, 16  ;;  %v2638_v39 = vld [vmem:[%s3257_s3 + $0x1d8] sm:$0xff]   ;;  %v2188_v45 = vcombine.low %v595_v24, %v587_v6 }
 0x10b   : > { %v707_v27 = vor.u32 %v706_v17, %v702_v14  ;;  %v714_v30 = vor.u32 %v713_v21, %v709_v20  ;;  %v2235_v31 = vcombine.low %v769_v11, %v770_v22  ;;  %2475 = vmatprep.subr.bf16.mxu0 %v2631_v12  ;;  %v3004_v47 = vld [vmem:[#allocation2 + $0x38] sm:$0xf]  ;;  %v2224_v48 = vcombine.low %v2920_v61, %v2942_v41  ;;  %v3013_v53 = vld [vmem:[#allocation2 + $0x3c] sm:$0x1]  ;;  %v3015_v54 = vld [vmem:[#allocation2 + $0x10] sm:$0xf] }
 0x10c   : > { %v2225_v36 = vcombine.low %v693_v7, %v700_v26  ;;  %v725_v44 = vshll.u32 %v2180_v23, 16  ;;  %v2641_v50 = vld [vmem:[%s3257_s3 + $0x198] sm:$0xff]   ;;  %v723_v51 = vshrl.u32 %v2180_v23, 16  ;;  %v2635_v55 = vld [vmem:[%s3257_s3 + $0x108] sm:$0xff]   ;;  %v720_v61 = vrot.slane %v718_v34, 1  ;;  %v2647_v58 = vld [vmem:[%s3257_s3 + $0x1e0] sm:$0xff]  }
 0x10d   : > { %v2234_v49 = vcombine.low %v707_v27, %v714_v30  ;;  %1840 = vmatmul.mubr.bf16.gmra.mrb[12].mxu0 %v2235_v31  ;;  %v772_v57 = vrot.slane %v2188_v45, 1  ;;  %v3023_v16 = vld [vmem:[#allocation2 + $0x18] sm:$0xf]  ;;  %v3025_v59 = vld [vmem:[#allocation2 + $0x14] sm:$0x1]  ;;  %v716_v62 = vshrl.u32 %v2179_v18, 16  ;;  %v2182_v6 = vcombine.low %v3004_v47, %v3013_v53 }
 0x10e   : > { %v2985_v28 = vld [vmem:[#allocation2 + $0x30] sm:$0xf]  ;;  %1766 = vmatprep.mubr.bf16.mxu1 %v2225_v36  ;;  %v727_v41 = vrot.slane %v725_v44, 1  ;;  %v588_v9 = vld [vmem:[#allocation2 + $0x34] sm:$0x1]  ;;  %2476 = vmatpush3.bf16.msra.mxu0 %v2636_v33  ;;  %v771_v63 = vrot.slane %v2187_v35, 1  ;;  %v2207_v12 = vcombine.low %v3015_v54, %v3025_v59  ;;  %v2233_v22 = vcombine.low %v2949_v46, %v2944_v43 }
 0x10f   : > { %v2245_v38 = vcombine.low %v2990_v32, %v2985_v28  ;;  %v3011_v52 = vld [vmem:[#allocation2 + $0x30] sm:$0xf]  ;;  %1767 = vmatmul.mubr.bf16.vlgmr.msra.gmra.mrb[0].mxu1 %v2224_v48  ;;  %v3027_v60 = vld [vmem:[#allocation2 + $0x1c] sm:$0x1]  ;;  %v597_v1 = vld [vmem:[#allocation2 + $0x38] sm:$0xe]  ;;  %2477 = vmatprep.subr.bf16.mxu0 %v2638_v39  ;;  %v721_v8 = vor.u32 %v720_v61, %v716_v62 }
 0x110   : > { %2432 = vmatpush3.bf16.msra.mxu1 %v2624_v29  ;;  %1774 = vmatprep.mubr.bf16.mxu1 %v2234_v49  ;;  %v596_v0 = vld [vmem:[#allocation2 + $0x30] sm:$0xe]  ;;  %v728_v3 = vor.u32 %v727_v41, %v723_v51  ;;  %v2181_v4 = vcombine.low %v3011_v52, %v588_v9  ;;  %v2244_v10 = vcombine.low %v771_v63, %v772_v57  ;;  %v2652_v11 = vld [vmem:[%s3257_s3 + $0x1a0] sm:$0xff]   ;;  %v3045_v14 = vld [vmem:[#allocation2 + $0x38] sm:$0xf]  ;;  %v739_v19 = vshll.u32 %v2182_v6, 16 }
 0x111   : > { %1847 = vmatprep.mubr.bf16.mxu0 %v2245_v38  ;;  %2433 = vmatprep.subr.bf16.mxu1 %v2630_v37  ;;  %v2637_v42 = vld [vmem:[%s3257_s3 + $0x150] sm:$0xff]   ;;  %v2208_v13 = vcombine.low %v3023_v16, %v3027_v60  ;;  %v3047_v17 = vld [vmem:[#allocation2 + $0x40] sm:$0xf]  ;;  %v2189_v20 = vcombine.low %v596_v0, %v588_v9  ;;  %v2190_v21 = vcombine.low %v597_v1, %v3013_v53  ;;  %v2646_v23 = vld [vmem:[%s3257_s3 + $0x158] sm:$0xff]   ;;  %v946_v26 = vshll.u32 %v2207_v12, 16 }
 0x112   : > { %v2640_v7 = vld [vmem:[%s3257_s3 + $0x110] sm:$0xff]   ;;  %2478 = vmatpush3.bf16.msra.mxu0 %v2641_v50  ;;  %v732_v18 = vshll.u32 %v2181_v4, 16  ;;  %v2254_v24 = vcombine.low %v3045_v14, %v3047_v17  ;;  %v3057_v27 = vld [vmem:[#allocation2 + $0x20] sm:$0xf]  ;;  %v3059_v29 = vld [vmem:[#allocation2 + $0x28] sm:$0xf]  ;;  %v2243_v30 = vcombine.low %v721_v8, %v728_v3 }
 0x113   : > { %2479 = vmatprep.subr.bf16.mxu0 %v2647_v58  ;;  %v2654_v43 = vld [vmem:[%s3257_s3 + $0x1e8] sm:$0xff]   ;;  %v730_v46 = vshrl.u32 %v2181_v4, 16  ;;  %v737_v31 = vshrl.u32 %v2182_v6, 16  ;;  %v953_v33 = vshll.u32 %v2208_v13, 16  ;;  %v3064_v34 = vld [vmem:[#allocation2 + $0x24] sm:$0x1] }
 0x114   : > { %2434 = vmatpush3.bf16.msra.mxu1 %v2635_v55  ;;  %v734_v35 = vrot.slane %v732_v18, 1  ;;  %v741_v36 = vrot.slane %v739_v19, 1  ;;  %v944_v37 = vshrl.u32 %v2207_v12, 16  ;;  %v948_v38 = vrot.slane %v946_v26, 1  ;;  %v3066_v39 = vld [vmem:[#allocation2 + $0x2c] sm:$0x1] }
 0x115   : > { %2435 = vmatprep.subr.bf16.mxu1 %v2637_v42  ;;  %1848 = vmatmul.mubr.bf16.gmra.mrb[16].mxu0 %v2244_v10  ;;  %v2657_v44 = vld [vmem:[%s3257_s3 + $0x1a8] sm:$0xff]   ;;  %v773_v45 = vrot.slane %v2189_v20, 1  ;;  %v774_v48 = vrot.slane %v2190_v21, 1  ;;  %v955_v49 = vrot.slane %v953_v33, 1  ;;  %v3071_v50 = vld [vmem:[#allocation2 + $0x14] sm:$0x1]  ;;  %v3081_v41 = vcombine.low %v3057_v27, %v3064_v34 }
 0x116   : > { %1855 = vmatprep.mubr.bf16.mxu0 %v2254_v24  ;;  %2480 = vmatpush3.bf16.msra.mxu0 %v2652_v11  ;;  %v2651_v51 = vld [vmem:[%s3257_s3 + $0x118] sm:$0xff]   ;;  %v2663_v53 = vld [vmem:[%s3257_s3 + $0x1f0] sm:$0xff]   ;;  %v949_v55 = vor.u32 %v948_v38, %v944_v37  ;;  %v951_v61 = vshrl.u32 %v2208_v13, 16  ;;  %v3083_v57 = vld [vmem:[#allocation2 + $0xc] sm:$0x1]  ;;  %v2210_v62 = vcombine.low %v3059_v29, %v3066_v39  ;;  %v735_v63 = vor.u32 %v734_v35, %v730_v46 }
 0x117   : > { %1775 = vmatmul.mubr.bf16.gmra.mrb[4].mxu1 %v2233_v22  ;;  %v2653_v58 = vld [vmem:[%s3257_s3 + $0x160] sm:$0xff]   ;;  %2481 = vmatprep.subr.bf16.mxu0 %v2654_v43  ;;  %v2665_v9 = vld [vmem:[%s3257_s3 + $0x1b0] sm:$0xff]   ;;  %v742_v0 = vor.u32 %v741_v36, %v737_v31  ;;  %v3095_v4 = vld [vmem:[#allocation2 + $0x38] sm:$0xf]  ;;  %v3099_v6 = vcombine.low %v2929_v15, %v3071_v50  ;;  %v960_v8 = vshll.u32 %v3081_v41, 16  ;;  %v3111_v15 = vcombine.low %v2935_v25, %v3083_v57 }
 0x118   : > { %2436 = vmatpush3.bf16.msra.mxu1 %v2640_v7  ;;  %1782 = vmatprep.mubr.bf16.mxu1 %v2243_v30  ;;  %v956_v1 = vor.u32 %v955_v49, %v951_v61  ;;  %v615_v42 = vld [vmem:[#allocation2 + $0x10] sm:$0xe]  ;;  %v2253_v7 = vcombine.low %v773_v45, %v774_v48  ;;  %v967_v10 = vshll.u32 %v2210_v62, 16  ;;  %v3102_v11 = vld [vmem:[#allocation2 + $0x34] sm:$0x1]  ;;  %v2656_v13 = vld [vmem:[%s3257_s3 + $0x120] sm:$0xff]   ;;  %v2242_v19 = vcombine.low %v2973_v2, %v2977_v5 }
 0x119   : > { %2437 = vmatprep.subr.bf16.mxu1 %v2646_v23  ;;  %v3093_v3 = vld [vmem:[#allocation2 + $0x30] sm:$0xf]  ;;  %v3104_v12 = vld [vmem:[#allocation2 + $0x3c] sm:$0x1]  ;;  %v2662_v20 = vld [vmem:[%s3257_s3 + $0x168] sm:$0xff]   ;;  %v965_v23 = vshrl.u32 %v2210_v62, 16  ;;  %v2252_v26 = vcombine.low %v735_v63, %v742_v0  ;;  %v2200_v25 = vcombine.low %v615_v42, %v3071_v50  ;;  %v2230_v42 = vcombine.low %v3015_v54, %v3023_v16 }
 0x11a   : > { %2482 = vmatpush3.bf16.msra.mxu0 %v2657_v44  ;;  %v2231_v18 = vcombine.low %v949_v55, %v956_v1  ;;  %v2669_v21 = vld [vmem:[%s3257_s3 + $0x1f8] sm:$0xff]   ;;  %v614_v22 = vld [vmem:[#allocation2 + $0x8] sm:$0xe]  ;;  %v969_v24 = vrot.slane %v967_v10, 1  ;;  %v3124_v30 = vcombine.low %v3093_v3, %v3102_v11  ;;  %v3128_v2 = vcombine.low %v3095_v4, %v3104_v12  ;;  %v3136_v33 = vld [vmem:[#allocation2 + $0x4c] sm:$0x1] }
 0x11b   : > { %2483 = vmatprep.subr.bf16.mxu0 %v2663_v53  ;;  %v3130_v5 = vld [vmem:[#allocation2 + $0x48] sm:$0xf]  ;;  %v825_v43 = vshll.u32 %v3099_v6, 16  ;;  %v2672_v46 = vld [vmem:[%s3257_s3 + $0x1b8] sm:$0xff]   ;;  %v962_v31 = vrot.slane %v960_v8, 1  ;;  %v2199_v37 = vcombine.low %v614_v22, %v3083_v57  ;;  %v2668_v38 = vld [vmem:[%s3257_s3 + $0x170] sm:$0xff]  }
 0x11c   : > { %2438 = vmatpush3.bf16.msra.mxu1 %v2651_v51  ;;  %v609_v35 = vld [vmem:[#allocation2 + $0x24] sm:$0x1]  ;;  %v2664_v36 = vld [vmem:[%s3257_s3 + $0x128] sm:$0xff]   ;;  %v958_v44 = vshrl.u32 %v3081_v41, 16  ;;  %v970_v45 = vor.u32 %v969_v24, %v965_v23  ;;  %v974_v48 = vshll.u32 %v3124_v30, 16  ;;  %v981_v49 = vshll.u32 %v3128_v2, 16 }
 0x11d   : > { %2439 = vmatprep.subr.bf16.mxu1 %v2653_v58  ;;  %1856 = vmatmul.mubr.bf16.gmra.mrb[20].mxu0 %v2253_v7  ;;  %v818_v50 = vshll.u32 %v3111_v15, 16  ;;  %v896_v51 = vrot.slane %v2200_v25, 1  ;;  %v3149_v53 = vld [vmem:[#allocation2 + $0x40] sm:$0xf]  ;;  %v3151_v55 = vld [vmem:[#allocation2 + $0x44] sm:$0x1]  ;;  %v3155_v61 = vcombine.low %v3130_v5, %v3136_v33  ;;  %v3158_v58 = vcombine.low %v2940_v40, %v609_v35 }
 0x11e   : > { %1961 = vmatprep.mubr.bf16.mxu0 %v2231_v18  ;;  %2484 = vmatpush3.bf16.msra.mxu0 %v2665_v9  ;;  %v827_v57 = vrot.slane %v825_v43, 1  ;;  %v2251_v41 = vcombine.low %v3011_v52, %v3004_v47  ;;  %v963_v9 = vor.u32 %v962_v31, %v958_v44  ;;  %v617_v62 = vld [vmem:[#allocation2 + $0x20] sm:$0xe]  ;;  %v608_v63 = vld [vmem:[#allocation2 + $0x1c] sm:$0x1]  ;;  %v2671_v0 = vld [vmem:[%s3257_s3 + $0x130] sm:$0xff]   ;;  %v3174_v18 = vcombine.low %v3149_v53, %v3151_v55 }
 0x11f   : > { %1783 = vmatmul.mubr.bf16.gmra.mrb[8].mxu1 %v2242_v19  ;;  %2485 = vmatprep.subr.bf16.mxu0 %v2669_v21  ;;  %v895_v1 = vrot.slane %v2199_v37, 1  ;;  %v972_v7 = vshrl.u32 %v3124_v30, 16  ;;  %v979_v40 = vshrl.u32 %v3128_v2, 16  ;;  %v2675_v47 = vld [vmem:[%s3257_s3 + $0x178] sm:$0xff]   ;;  %v976_v10 = vrot.slane %v974_v48, 1 }
 0x120   : > { %2440 = vmatpush3.bf16.msra.mxu1 %v2656_v13  ;;  %1790 = vmatprep.mubr.bf16.mxu1 %v2252_v26  ;;  %v2240_v52 = vcombine.low %v963_v9, %v970_v45  ;;  %v616_v8 = vld [vmem:[#allocation2 + $0x18] sm:$0xe]  ;;  %v983_v13 = vrot.slane %v981_v49, 1  ;;  %v820_v19 = vrot.slane %v818_v50, 1  ;;  %v823_v54 = vshrl.u32 %v3099_v6, 16 }
 0x121   : > { %2441 = vmatprep.subr.bf16.mxu1 %v2662_v20  ;;  %v2229_v16 = vcombine.low %v895_v1, %v896_v51  ;;  %v2202_v20 = vcombine.low %v617_v62, %v609_v35  ;;  %v2193_v21 = vcombine.low %v2959_v56, %v608_v63  ;;  %v995_v22 = vshll.u32 %v3155_v61, 16  ;;  %v610_v26 = vld [vmem:[#allocation2 + $0x2c] sm:$0x1]  ;;  %v2677_v25 = vld [vmem:[%s3257_s3 + $0x138] sm:$0xff]   ;;  %v611_v2 = vld [vmem:[#allocation2 + $0x34] sm:$0x1] }
 0x122   : > { %2486 = vmatpush3.bf16.msra.mxu0 %v2672_v46  ;;  %v816_v23 = vshrl.u32 %v3111_v15, 16  ;;  %v828_v24 = vor.u32 %v827_v57, %v823_v54  ;;  %v2201_v6 = vcombine.low %v616_v8, %v608_v63  ;;  %v839_v30 = vshll.u32 %v3158_v58, 16  ;;  %v2682_v56 = vld [vmem:[%s3257_s3 + $0x200] sm:$0xff]   ;;  %v618_v44 = vld [vmem:[#allocation2 + $0x28] sm:$0xe] }
 0x123   : > { %v977_v43 = vor.u32 %v976_v10, %v972_v7  ;;  %v984_v46 = vor.u32 %v983_v13, %v979_v40  ;;  %v988_v15 = vshll.u32 %v3174_v18, 16  ;;  %v898_v35 = vrot.slane %v2202_v20, 1  ;;  %v619_v45 = vld [vmem:[#allocation2 + $0x30] sm:$0xe]  ;;  %v621_v20 = vld [vmem:[#allocation2 + $0x40] sm:$0xe] }
 0x124   : > { %2442 = vmatpush3.bf16.msra.mxu1 %v2664_v36  ;;  %v821_v31 = vor.u32 %v820_v19, %v816_v23  ;;  %v993_v36 = vshrl.u32 %v3155_v61, 16  ;;  %v832_v37 = vshll.u32 %v2193_v21, 16  ;;  %v997_v48 = vrot.slane %v995_v22, 1  ;;  %v2686_v61 = vld [vmem:[%s3257_s3 + $0x208] sm:$0xff]  }
 0x125   : > { %2443 = vmatprep.subr.bf16.mxu1 %v2668_v38  ;;  %1962 = vmatmul.mubr.bf16.vlgmr.msra.gmra.mrb[24].mxu0 %v2230_v42  ;;  %v3190_v38 = vcombine.low %v2990_v32, %v610_v26  ;;  %v2196_v49 = vcombine.low %v2985_v28, %v611_v2  ;;  %v897_v51 = vrot.slane %v2201_v6, 1  ;;  %v2239_v57 = vcombine.low %v3057_v27, %v3059_v29  ;;  %v612_v29 = vld [vmem:[#allocation2 + $0x3c] sm:$0x1] }
 0x126   : > { %1969 = vmatprep.mubr.bf16.mxu0 %v2240_v52  ;;  %v2228_v50 = vcombine.low %v821_v31, %v828_v24  ;;  %v841_v9 = vrot.slane %v839_v30, 1  ;;  %v986_v32 = vshrl.u32 %v3174_v18, 16  ;;  %v990_v62 = vrot.slane %v988_v15, 1  ;;  %v2689_v52 = vld [vmem:[%s3257_s3 + $0x210] sm:$0xff]  }
 0x127   : > { %1791 = vmatmul.mubr.bf16.gmra.mrb[12].mxu1 %v2251_v41  ;;  %v2249_v41 = vcombine.low %v977_v43, %v984_v46  ;;  %v2238_v63 = vcombine.low %v897_v51, %v898_v35  ;;  %v2204_v28 = vcombine.low %v619_v45, %v611_v2  ;;  %v834_v1 = vrot.slane %v832_v37, 1  ;;  %v2696_v43 = vld [vmem:[%s3257_s3 + $0x220] sm:$0xff]   ;;  %v2700_v45 = vld [vmem:[%s3257_s3 + $0x228] sm:$0xff]   ;;  %v640_v51 = vld [vmem:[#allocation2 + $0x18] sm:$0xe] }
 0x128   : > { %2444 = vmatpush3.bf16.msra.mxu1 %v2671_v0  ;;  %1896 = vmatprep.mubr.bf16.mxu1 %v2229_v16  ;;  %v2203_v0 = vcombine.low %v618_v44, %v610_v26  ;;  %v837_v42 = vshrl.u32 %v3158_v58, 16  ;;  %v846_v27 = vshll.u32 %v3190_v38, 16  ;;  %v998_v7 = vor.u32 %v997_v48, %v993_v36  ;;  %v620_v16 = vld [vmem:[#allocation2 + $0x38] sm:$0xe]  ;;  %v639_v36 = vld [vmem:[#allocation2 + $0x10] sm:$0xe] }
 0x129   : > { %2445 = vmatprep.subr.bf16.mxu1 %v2675_v47  ;;  %v853_v40 = vshll.u32 %v2196_v49, 16  ;;  %v613_v47 = vld [vmem:[#allocation2 + $0x44] sm:$0x1]  ;;  %v830_v8 = vshrl.u32 %v2193_v21, 16  ;;  %v991_v13 = vor.u32 %v990_v62, %v986_v32  ;;  %v900_v19 = vrot.slane %v2204_v28, 1 }
 0x12a   : > { %v842_v10 = vor.u32 %v841_v9, %v837_v42  ;;  %v899_v18 = vrot.slane %v2203_v0, 1  ;;  %v2197_v58 = vcombine.low %v3045_v14, %v612_v29  ;;  %v2198_v22 = vcombine.low %v3047_v17, %v613_v47  ;;  %v642_v32 = vld [vmem:[#allocation2 + $0x28] sm:$0xe]  ;;  %v644_v0 = vld [vmem:[#allocation2 + $0x38] sm:$0xe] }
 0x12b   : > { %v835_v54 = vor.u32 %v834_v1, %v830_v8  ;;  %v2248_v23 = vcombine.low %v3093_v3, %v3095_v4  ;;  %v844_v24 = vshrl.u32 %v3190_v38, 16  ;;  %v848_v26 = vrot.slane %v846_v27, 1  ;;  %v641_v28 = vld [vmem:[#allocation2 + $0x20] sm:$0xe] }
 0x12c   : > { %2446 = vmatpush3.bf16.msra.mxu1 %v2677_v25  ;;  %v2693_v25 = vld [vmem:[%s3257_s3 + $0x218] sm:$0xff]   ;;  %v2258_v6 = vcombine.low %v991_v13, %v998_v7  ;;  %v851_v14 = vshrl.u32 %v2196_v49, 16  ;;  %v855_v30 = vrot.slane %v853_v40, 1  ;;  %v2247_v2 = vcombine.low %v899_v18, %v900_v19  ;;  %v645_v8 = vld [vmem:[#allocation2 + $0x40] sm:$0xe] }
 0x12d   : > { %2537 = vmatprep.subr.bf16.mxu1 %v2682_v56  ;;  %1970 = vmatmul.mubr.bf16.gmra.mrb[28].mxu0 %v2239_v57  ;;  %v2237_v21 = vcombine.low %v835_v54, %v842_v10  ;;  %v2206_v17 = vcombine.low %v621_v20, %v613_v47  ;;  %v860_v3 = vshll.u32 %v2197_v58, 16  ;;  %v867_v4 = vshll.u32 %v2198_v22, 16  ;;  %v646_v10 = vld [vmem:[#allocation2 + $0x48] sm:$0xe] }
 0x12e   : > { %1977 = vmatprep.mubr.bf16.mxu0 %v2249_v41  ;;  %v849_v46 = vor.u32 %v848_v26, %v844_v24  ;;  %v856_v15 = vor.u32 %v855_v30, %v851_v14  ;;  %v2257_v37 = vcombine.low %v3149_v53, %v3130_v5  ;;  %v858_v38 = vshrl.u32 %v2197_v58, 16  ;;  %v2701_v53 = vld [vmem:[%s3257_s3 + $0x230] sm:$0xff]  }
 0x12f   : > { %1897 = vmatmul.mubr.bf16.vlgmr.msra.gmra.mrb[16].mxu1 %v2228_v50  ;;  %v902_v35 = vrot.slane %v2206_v17, 1  ;;  %v862_v48 = vrot.slane %v860_v3, 1  ;;  %v865_v49 = vshrl.u32 %v2198_v22, 16  ;;  %v869_v50 = vrot.slane %v867_v4, 1 }
 0x130   : > { %2538 = vmatpush3.bf16.msra.mxu1 %v2682_v56  ;;  %1904 = vmatprep.mubr.bf16.mxu1 %v2238_v63  ;;  %v2205_v56 = vcombine.low %v620_v16, %v612_v29  ;;  %v2246_v44 = vcombine.low %v849_v46, %v856_v15  ;;  %v2216_v5 = vcombine.low %v640_v51, %v3027_v60  ;;  %v643_v63 = vld [vmem:[#allocation2 + $0x30] sm:$0xe]  ;;  %v2704_v60 = vld [vmem:[%s3257_s3 + $0x238] sm:$0xff]  }
 0x131   : > { %2539 = vmatprep.subr.bf16.mxu1 %v2686_v61  ;;  %v863_v41 = vor.u32 %v862_v48, %v858_v38  ;;  %v870_v9 = vor.u32 %v869_v50, %v865_v49  ;;  %v2219_v29 = vcombine.low %v643_v63, %v3102_v11  ;;  %v2220_v7 = vcombine.low %v644_v0, %v3104_v12 }
 0x132   : > { %v901_v31 = vrot.slane %v2205_v56, 1  ;;  %v1024_v1 = vrot.slane %v2216_v5, 1  ;;  %v2217_v40 = vcombine.low %v641_v28, %v3064_v34  ;;  %v2221_v19 = vcombine.low %v645_v8, %v3151_v55 }
 0x133   : > { %v2255_v42 = vcombine.low %v863_v41, %v870_v9  ;;  %v2222_v11 = vcombine.low %v646_v10, %v3136_v33  ;;  %v2223_v33 = vld [vmem:[%s3258_s4] ss:$0 sm:$0xff] }
 0x134   : > { %2540 = vmatpush3.bf16.msra.mxu1 %v2686_v61  ;;  %v2256_v57 = vcombine.low %v901_v31, %v902_v35  ;;  %v2215_v61 = vcombine.low %v639_v36, %v3025_v59  ;;  %v2218_v59 = vcombine.low %v642_v32, %v3066_v39  ;;  %v1028_v39 = vrot.slane %v2220_v7, 1 }
 0x135   : > { %2541 = vmatprep.subr.bf16.mxu1 %v2689_v52  ;;  %1978 = vmatmul.mubr.bf16.gmra.mrb[32].mxu0 %v2248_v23  ;;  %v1025_v13 = vrot.slane %v2217_v40, 1  ;;  %v1029_v34 = vrot.slane %v2221_v19, 1  ;;  %v1030_v12 = vrot.slane %v2222_v11, 1 }
 0x136   : > { %1985 = vmatprep.mubr.bf16.mxu0 %v2258_v6  ;;  %v1023_v62 = vrot.slane %v2215_v61, 1  ;;  %v1026_v47 = vrot.slane %v2218_v59, 1 }
 0x137   : > { %1905 = vmatmul.mubr.bf16.gmra.mrb[20].mxu1 %v2237_v21  ;;  %v2259_v54 = vcombine.low %v1029_v34, %v1030_v12 }
 0x138   : > { %2542 = vmatpush3.bf16.msra.mxu1 %v2689_v52  ;;  %1912 = vmatprep.mubr.bf16.mxu1 %v2247_v2  ;;  %v2232_v27 = vcombine.low %v1023_v62, %v1024_v1  ;;  %v1027_v52 = vrot.slane %v2219_v29, 1  ;;  %v2241_v18 = vcombine.low %v1025_v13, %v1026_v47 }
 0x139   : > { %2543 = vmatprep.subr.bf16.mxu1 %v2693_v25 }
 0x13a   : > { %v2250_v58 = vcombine.low %v1027_v52, %v1028_v39 }
 0x13c   : > { %2544 = vmatpush3.bf16.msra.mxu1 %v2693_v25 }
 0x13d   : > { %2545 = vmatprep.subr.bf16.mxu1 %v2696_v43  ;;  %1986 = vmatmul.mubr.bf16.gmra.mrb[36].mxu0 %v2257_v37 }
 0x13f   : > { %1913 = vmatmul.mubr.bf16.gmra.mrb[24].mxu1 %v2246_v44 }
 0x140   : > { %2546 = vmatpush3.bf16.msra.mxu1 %v2696_v43  ;;  %1920 = vmatprep.mubr.bf16.mxu1 %v2256_v57 }
 0x141   : > { %2547 = vmatprep.subr.bf16.mxu1 %v2700_v45 }
 0x144   : > { %2548 = vmatpush3.bf16.msra.mxu1 %v2700_v45 }
 0x145   : > { %2549 = vmatprep.subr.bf16.mxu1 %v2701_v53 }
 0x147   : > { %1921 = vmatmul.mubr.bf16.gmra.mrb[28].mxu1 %v2255_v42 }
 0x148   : > { %2550 = vmatpush3.bf16.msra.mxu1 %v2701_v53  ;;  %2553 = vmatprep.mubr.bf16.mxu1 %v2232_v27 }
 0x149   : > { %2551 = vmatprep.subr.bf16.mxu1 %v2704_v60 }
 0x14c   : > { %2552 = vmatpush3.bf16.msra.mxu1 %v2704_v60 }
 0x14f   : > { %2554 = vmatmul.mubr.bf16.vlgmr.msra.gmra.mrb[32].mxu1 %v2241_v18 }
 0x150   : > { %2557 = vmatprep.mubr.bf16.mxu1 %v2250_v58 }
 0x157   : > { %2558 = vmatmul.mubr.bf16.gmra.mrb[36].mxu1 %v2259_v54 }
 0x1d8   : > { %v2407_v16 = vpop.f32.mrb[8].mxu0 }
 0x1d9   : > { %v2408_v20 = vpop.f32.mrb[9].mxu0 }
 0x1da   : > { %v2409_v22 = vadd.f32 %v2408_v20, %v2407_v16  ;;  %v2410_v23 = vpop.f32.mrb[10].mxu0 }
 0x1db   : > { %v2411_v24 = vpop.f32.mrb[11].mxu0 }
 0x1dc   : > { %v2412_v26 = vadd.f32 %v2411_v24, %v2410_v23 }
 0x1e0   : > { %v2413_v21 = vpop.f32.mrb[12].mxu0 }
 0x1e1   : > { %v2414_v25 = vpop.f32.mrb[13].mxu0 }
 0x1e2   : > { %v2367_v6 = vpop.f32.mrb[0].mxu1  ;;  %v2415_v14 = vadd.f32 %v2414_v25, %v2413_v21  ;;  %v2416_v55 = vpop.f32.mrb[14].mxu0 }
 0x1e3   : > { %v2368_v30 = vpop.f32.mrb[1].mxu1  ;;  %v2417_v2 = vpop.f32.mrb[15].mxu0 }
 0x1e4   : > { %v2369_v56 = vadd.f32 %v2368_v30, %v2367_v6  ;;  %v2370_v17 = vpop.f32.mrb[2].mxu1  ;;  %v2418_v3 = vadd.f32 %v2417_v2, %v2416_v55 }
 0x1e5   : > { %v2371_v4 = vpop.f32.mrb[3].mxu1 }
 0x1e6   : > { %v1769_v43 = vadd.f32 %v2369_v56, %v2223_v33  ;;  %v2372_v46 = vadd.f32 %v2371_v4, %v2370_v17 }
 0x1e8   : > { %v1772_v15 = vadd.f32 %v2372_v46, %v2223_v33  ;;  %v2419_v31 = vpop.f32.mrb[16].mxu0  ;;  %v1834_v35 = vadd.f32 %v2409_v22, %v1769_v43 }
 0x1e9   : > { %v2420_v36 = vpop.f32.mrb[17].mxu0 }
 0x1ea   : > { %v2373_v37 = vpop.f32.mrb[4].mxu1  ;;  %v2421_v38 = vadd.f32 %v2420_v36, %v2419_v31  ;;  %v2422_v44 = vpop.f32.mrb[18].mxu0  ;;  %v1837_v45 = vadd.f32 %v2412_v26, %v1772_v15 }
 0x1eb   : > { %v2374_v48 = vpop.f32.mrb[5].mxu1  ;;  %v2423_v49 = vpop.f32.mrb[19].mxu0 }
 0x1ec   : > { %v2375_v50 = vadd.f32 %v2374_v48, %v2373_v37  ;;  %v2376_v51 = vpop.f32.mrb[6].mxu1  ;;  %v2424_v57 = vadd.f32 %v2423_v49, %v2422_v44 }
 0x1ed   : > { %v2377_v61 = vpop.f32.mrb[7].mxu1 }
 0x1ee   : > { %v1777_v5 = vadd.f32 %v2375_v50, %v2223_v33  ;;  %v2378_v53 = vadd.f32 %v2377_v61, %v2376_v51 }
 0x1f0   : > { %v1780_v41 = vadd.f32 %v2378_v53, %v2223_v33  ;;  %v2425_v9 = vpop.f32.mrb[20].mxu0  ;;  %v1842_v32 = vadd.f32 %v2415_v14, %v1777_v5 }
 0x1f1   : > { %v2426_v62 = vpop.f32.mrb[21].mxu0 }
 0x1f2   : > { %v2379_v63 = vpop.f32.mrb[8].mxu1  ;;  %v2427_v0 = vadd.f32 %v2426_v62, %v2425_v9  ;;  %v2428_v28 = vpop.f32.mrb[22].mxu0  ;;  %v1845_v1 = vadd.f32 %v2418_v3, %v1780_v41 }
 0x1f3   : > { %v2380_v59 = vpop.f32.mrb[9].mxu1  ;;  %v2429_v42 = vpop.f32.mrb[23].mxu0 }
 0x1f4   : > { %v2381_v60 = vadd.f32 %v2380_v59, %v2379_v63  ;;  %v2382_v27 = vpop.f32.mrb[10].mxu1  ;;  %v2430_v29 = vadd.f32 %v2429_v42, %v2428_v28 }
 0x1f5   : > { %v2383_v7 = vpop.f32.mrb[11].mxu1 }
 0x1f6   : > { %v1785_v40 = vadd.f32 %v2381_v60, %v2223_v33  ;;  %v2384_v47 = vadd.f32 %v2383_v7, %v2382_v27 }
 0x1f8   : > { %v1788_v52 = vadd.f32 %v2384_v47, %v2223_v33  ;;  %v1850_v39 = vadd.f32 %v2421_v38, %v1785_v40  ;;  %v2487_v8 = vpop.f32.mrb[24].mxu0 }
 0x1f9   : > { %v2488_v13 = vpop.f32.mrb[25].mxu0 }
 0x1fa   : > { %v2385_v10 = vpop.f32.mrb[12].mxu1  ;;  %v1853_v18 = vadd.f32 %v2424_v57, %v1788_v52  ;;  %v2489_v11 = vadd.f32 %v2488_v13, %v2487_v8  ;;  %v2490_v58 = vpop.f32.mrb[26].mxu0 }
 0x1fb   : > { %v2386_v19 = vpop.f32.mrb[13].mxu1  ;;  %v2491_v54 = vpop.f32.mrb[27].mxu0 }
 0x1fc   : > { %v2387_v34 = vadd.f32 %v2386_v19, %v2385_v10  ;;  %v2388_v12 = vpop.f32.mrb[14].mxu1  ;;  %v2492_v20 = vadd.f32 %v2491_v54, %v2490_v58 }
 0x1fd   : > { %v2389_v16 = vpop.f32.mrb[15].mxu1 }
 0x1fe   : > { %v1793_v22 = vadd.f32 %v2387_v34, %v2223_v33  ;;  %v2390_v23 = vadd.f32 %v2389_v16, %v2388_v12 }
 0x200   : > { %v1796_v24 = vadd.f32 %v2390_v23, %v2223_v33  ;;  %v1858_v26 = vadd.f32 %v2427_v0, %v1793_v22  ;;  %v2493_v21 = vpop.f32.mrb[28].mxu0 }
 0x201   : > { %v2494_v6 = vpop.f32.mrb[29].mxu0 }
 0x202   : > { %v2447_v25 = vpop.f32.mrb[16].mxu1  ;;  %v1861_v14 = vadd.f32 %v2430_v29, %v1796_v24  ;;  %v2495_v30 = vadd.f32 %v2494_v6, %v2493_v21  ;;  %v2496_v2 = vpop.f32.mrb[30].mxu0 }
 0x203   : > { %v2448_v55 = vpop.f32.mrb[17].mxu1  ;;  %v2497_v3 = vpop.f32.mrb[31].mxu0 }
 0x204   : > { %v2449_v56 = vadd.f32 %v2448_v55, %v2447_v25  ;;  %v2450_v17 = vpop.f32.mrb[18].mxu1  ;;  %v2498_v43 = vadd.f32 %v2497_v3, %v2496_v2 }
 0x205   : > { %v2451_v4 = vpop.f32.mrb[19].mxu1 }
 0x206   : > { %v1899_v46 = vadd.f32 %v2449_v56, %v1834_v35  ;;  %v2452_v15 = vadd.f32 %v2451_v4, %v2450_v17 }
 0x208   : > { %v1902_v31 = vadd.f32 %v2452_v15, %v1837_v45  ;;  %v1964_v36 = vadd.f32 %v2489_v11, %v1899_v46  ;;  %v2499_v37 = vpop.f32.mrb[32].mxu0 }
 0x209   : > { %v2500_v33 = vpop.f32.mrb[33].mxu0 }
 0x20a   : > { %v2453_v38 = vpop.f32.mrb[20].mxu1  ;;  %v1967_v44 = vadd.f32 %v2492_v20, %v1902_v31  ;;  %v2501_v49 = vadd.f32 %v2500_v33, %v2499_v37  ;;  %v2502_v50 = vpop.f32.mrb[34].mxu0 }
 0x20b   : > { %v2454_v48 = vpop.f32.mrb[21].mxu1  ;;  %v2503_v61 = vpop.f32.mrb[35].mxu0 }
 0x20c   : > { %v2455_v51 = vadd.f32 %v2454_v48, %v2453_v38  ;;  %v2456_v57 = vpop.f32.mrb[22].mxu1  ;;  %v2504_v53 = vadd.f32 %v2503_v61, %v2502_v50 }
 0x20d   : > { %v2457_v5 = vpop.f32.mrb[23].mxu1 }
 0x20e   : > { %v1907_v41 = vadd.f32 %v2455_v51, %v1842_v32  ;;  %v2458_v9 = vadd.f32 %v2457_v5, %v2456_v57 }
 0x210   : > { %v1910_v62 = vadd.f32 %v2458_v9, %v1845_v1  ;;  %v1972_v63 = vadd.f32 %v2495_v30, %v1907_v41  ;;  %v2505_v35 = vpop.f32.mrb[36].mxu0 }
 0x211   : > { %v2506_v45 = vpop.f32.mrb[37].mxu0 }
 0x212   : > { %v2459_v0 = vpop.f32.mrb[24].mxu1  ;;  %v1975_v28 = vadd.f32 %v2498_v43, %v1910_v62  ;;  %v2507_v42 = vadd.f32 %v2506_v45, %v2505_v35  ;;  %v2508_v60 = vpop.f32.mrb[38].mxu0 }
 0x213   : > { %v2460_v59 = vpop.f32.mrb[25].mxu1  ;;  %v2509_v7 = vpop.f32.mrb[39].mxu0 }
 0x214   : > { %v2461_v27 = vadd.f32 %v2460_v59, %v2459_v0  ;;  %v2462_v29 = vpop.f32.mrb[26].mxu1  ;;  %v2510_v47 = vadd.f32 %v2509_v7, %v2508_v60 }
 0x215   : > { %v2463_v40 = vpop.f32.mrb[27].mxu1 }
 0x216   : > { %v1915_v52 = vadd.f32 %v2461_v27, %v1850_v39  ;;  %v2464_v8 = vadd.f32 %v2463_v40, %v2462_v29 }
 0x218   : > { %v1918_v10 = vadd.f32 %v2464_v8, %v1853_v18  ;;  %v1980_v32 = vadd.f32 %v2501_v49, %v1915_v52 }
 0x21a   : > { %v2465_v13 = vpop.f32.mrb[28].mxu1  ;;  %v1983_v1 = vadd.f32 %v2504_v53, %v1918_v10 }
 0x21b   : > { %v2466_v19 = vpop.f32.mrb[29].mxu1 }
 0x21c   : > { %v2467_v11 = vadd.f32 %v2466_v19, %v2465_v13  ;;  %v2468_v58 = vpop.f32.mrb[30].mxu1 }
 0x21d   : > { %v2469_v34 = vpop.f32.mrb[31].mxu1 }
 0x21e   : > { %v1923_v12 = vadd.f32 %v2467_v11, %v1858_v26  ;;  %v2470_v54 = vadd.f32 %v2469_v34, %v2468_v58 }
 0x220   : > { %v1926_v16 = vadd.f32 %v2470_v54, %v1861_v14  ;;  %v1988_v20 = vadd.f32 %v2507_v42, %v1923_v12 }
 0x222   : > { %v2555_v22 = vpop.f32.mrb[32].mxu1  ;;  %v1991_v23 = vadd.f32 %v2510_v47, %v1926_v16 }
 0x223   : > { %v2037_v24 = vadd.f32 %v2555_v22, %v1972_v63  ;;  %v2028_v21 = vpop.f32.mrb[33].mxu1 }
 0x224   : > { %v2029_v25 = vadd.f32 %v2028_v21, %v1964_v36  ;;  %v2556_v39 = vpop.f32.mrb[34].mxu1 }
 0x225   : > { %vm2061_vm15 = vcmp.ge.f32.partialorder %v2037_v24, 0.0  ;;  %v2069_v18 = vmul.f32 0.01, %v2037_v24  ;;  %v2040_v26 = vadd.f32 %v2556_v39, %v1975_v28  ;;  %v2031_v6 = vpop.f32.mrb[35].mxu1 }
 0x226   : > { %vm2059_vm0 = vcmp.ge.f32.partialorder %v2029_v25, 0.0  ;;  %v2067_v14 = vmul.f32 0.01, %v2029_v25  ;;  %v2032_v55 = vadd.f32 %v2031_v6, %v1967_v44 }
 0x227   : > { %v2077_v30 = vsel %vm2061_vm15, %v2037_v24, %v2069_v18  ;;  %vm2062_vm1 = vcmp.ge.f32.partialorder %v2040_v26, 0.0  ;;  %v2070_v2 = vmul.f32 0.01, %v2040_v26 }
 0x228   : > { %2085 = vst [vmem:[%s3241_s20 + $0x10] sm:$0xff] %v2077_v30  ;;  %v2075_v56 = vsel %vm2059_vm0, %v2029_v25, %v2067_v14  ;;  %vm2060_vm2 = vcmp.ge.f32.partialorder %v2032_v55, 0.0  ;;  %v2068_v17 = vmul.f32 0.01, %v2032_v55 }
 0x229   : > { %2083 = vst [vmem:[%s3241_s20] sm:$0xff] %v2075_v56  ;;  %v2078_v3 = vsel %vm2062_vm1, %v2040_v26, %v2070_v2 }
 0x22a   : > { %2086 = vst [vmem:[%s3241_s20 + $0x18] sm:$0xff] %v2078_v3  ;;  %v2076_v4 = vsel %vm2060_vm2, %v2032_v55, %v2068_v17  ;;  %v2559_v43 = vpop.f32.mrb[36].mxu1 }
 0x22b   : > { %2084 = vst [vmem:[%s3241_s20 + $0x8] sm:$0xff] %v2076_v4  ;;  %v2053_v46 = vadd.f32 %v2559_v43, %v1988_v20  ;;  %v2044_v15 = vpop.f32.mrb[37].mxu1 }
 0x22c   : > { %v2045_v31 = vadd.f32 %v2044_v15, %v1980_v32  ;;  %v2560_v36 = vpop.f32.mrb[38].mxu1 }
 0x22d   : > { %vm2065_vm3 = vcmp.ge.f32.partialorder %v2053_v46, 0.0  ;;  %v2073_v37 = vmul.f32 0.01, %v2053_v46  ;;  %v2056_v38 = vadd.f32 %v2560_v36, %v1991_v23  ;;  %v2047_v33 = vpop.f32.mrb[39].mxu1 }
 0x22e   : > { %vm2063_vm4 = vcmp.ge.f32.partialorder %v2045_v31, 0.0  ;;  %v2071_v44 = vmul.f32 0.01, %v2045_v31  ;;  %v2048_v48 = vadd.f32 %v2047_v33, %v1983_v1 }
 0x22f   : > { %v2081_v49 = vsel %vm2065_vm3, %v2053_v46, %v2073_v37  ;;  %vm2066_vm5 = vcmp.ge.f32.partialorder %v2056_v38, 0.0  ;;  %v2074_v50 = vmul.f32 0.01, %v2056_v38 }
 0x230   : > { %2089 = vst [vmem:[%s3241_s20 + $0x30] sm:$0xff] %v2081_v49  ;;  %v2079_v51 = vsel %vm2063_vm4, %v2045_v31, %v2071_v44  ;;  %vm2064_vm6 = vcmp.ge.f32.partialorder %v2048_v48, 0.0  ;;  %v2072_v57 = vmul.f32 0.01, %v2048_v48 }
 0x231   : > { %2087 = vst [vmem:[%s3241_s20 + $0x20] sm:$0xff] %v2079_v51  ;;  %v2082_v61 = vsel %vm2066_vm5, %v2056_v38, %v2074_v50 }
 0x232   : > { %2090 = vst [vmem:[%s3241_s20 + $0x38] sm:$0xff] %v2082_v61  ;;  %v2080_v5 = vsel %vm2064_vm6, %v2048_v48, %v2072_v57 }
 0x233   : > { %2088 = vst [vmem:[%s3241_s20 + $0x28] sm:$0xff] %v2080_v5 }
 0x234 PF: > { %s15_s18 = sadd.s32 1, %s2715_s18  }
 0x235   : > { %p12_p4 = scmp.ge.s32.totalorder %s15_s18, 4  }
 0x237   :  { %14 = sbr.rel (!%p12_p4) target bundleno = 1 (0x1), region = 72 }

</bundles_post_ra>
